<compile_context>
chip_gen: v7x
topology: tpu7x:2x2x1
jax: 0.10.0
libtpu: 0.0.40
codegen_flags: <defaults>
</compile_context>

<pallas_src>
import functools

import numpy as np

import jax
import jax.numpy as jnp
from jax import lax
from jax.experimental import pallas as pl
from jax.experimental.pallas import tpu as pltpu

KS = 3     # kernel_size
MID = 12   # hidden channel count hard-coded in RCAB_bn_4 / CALayer_4

# 3x3 tap offsets, ordered to match the weight layout built in fold_params().
_TAPS = tuple((dy, dx) for dy in (-1, 0, 1) for dx in (-1, 0, 1))
_CENTER = KS * KS // 2          # index of the (0, 0) tap

# The roll+mask emulation of zero padding assumes |dy*W + dx| <= W + 1 < HW,
# i.e. every wrapped lane is a lane that the border mask zeroes anyway.
assert KS == 3, "roll+mask padding scheme assumes a 3x3 kernel"


def _mask_row(t):
    # mask slab has 8 rows: taps 0..3 then 5..8 (centre tap needs no mask).
    return t if t < _CENTER else t - 1


def _rcab_kernel(x_ref, w1_ref, w2_ref, mask_ref, cst_ref, o_ref, *,
                 W, images_per_step):
    C = x_ref.shape[2]
    HW = x_ref.shape[3]

    # --- tiny folded constants, packed in one (16, 128) VMEM block ----------
    t1   = cst_ref[pl.ds(0, MID), pl.ds(0, 1)]       # (MID,1) conv1 bias+BN shift
    t2   = cst_ref[pl.ds(0, C),   pl.ds(1, 1)]       # (C,1)   conv2 bias+BN shift
    bdu2 = cst_ref[pl.ds(0, C),   pl.ds(2, 1)]       # (C,1)
    wdu1 = cst_ref[pl.ds(0, C),   pl.ds(16, MID)]    # (C,MID)
    wdu2 = cst_ref[pl.ds(0, C),   pl.ds(32, MID)]    # (C,MID)
    bdu1 = cst_ref[pl.ds(8, 1),   pl.ds(16, MID)]    # (1,MID)

    inv_hw = 1.0 / HW

    for i in range(images_per_step):
        x = x_ref[0, i].astype(jnp.float32)          # (C, HW)
        xb = x.astype(jnp.bfloat16)

        # --- conv1 (C -> 12, 3x3 same), bias+BN folded, ReLU ----------------
        # Roll + mask the small (C, HW) input; bf16 operands, f32 accumulate.
        h = jnp.dot(w1_ref[_CENTER], xb, preferred_element_type=jnp.float32)
        for t, (dy, dx) in enumerate(_TAPS):
            if t == _CENTER:
                continue
            d = dy * W + dx
            v = pltpu.roll(x, shift=(-d) % HW, axis=1)
            v = v * mask_ref[pl.ds(_mask_row(t), 1), :]
            h = h + jnp.dot(w1_ref[t], v.astype(jnp.bfloat16),
                            preferred_element_type=jnp.float32)
        h = jnp.maximum(h + t1, 0.0)                 # (MID, HW)
        hb = h.astype(jnp.bfloat16)

        # --- conv2 (12 -> C, 3x3 same), bias+BN folded -----------------------
        # Dot first, then roll + mask the small (C, HW) per-tap partials.
        r = jnp.dot(w2_ref[_CENTER], hb, preferred_element_type=jnp.float32)
        for t, (dy, dx) in enumerate(_TAPS):
            if t == _CENTER:
                continue
            d = dy * W + dx
            p = jnp.dot(w2_ref[t], hb, preferred_element_type=jnp.float32)
            p = pltpu.roll(p, shift=(-d) % HW, axis=1)
            r = r + p * mask_ref[pl.ds(_mask_row(t), 1), :]
        r = r + t2                                   # (C, HW)

        # --- CALayer_4: avg-pool -> 1x1 -> ReLU -> 1x1 -> sigmoid (VPU/XLU) --
        y = jnp.sum(r, axis=1, keepdims=True) * inv_hw           # (C, 1)
        z = jnp.sum(wdu1 * y, axis=0, keepdims=True) + bdu1      # (1, MID)
        z = jnp.maximum(z, 0.0)
        a = jnp.sum(wdu2 * z, axis=1, keepdims=True) + bdu2      # (C, 1)
        a = jax.nn.sigmoid(a)

        # --- channel gate + residual add; lane-dense unmasked store ----------
        o_ref[0, i] = (r * a + x).astype(o_ref.dtype)


def _tensorcores_per_chip():
    """Best-effort TensorCores-per-chip count (any answer stays correct)."""
    try:
        kind = jax.devices()[0].device_kind.lower()
    except Exception:
        return 1
    if any(tag in kind for tag in ("v7", "v5p", "v4")):
        return 2       # v7x / megacore chips: shard the batch across cores
    return 1           # v5e / v6e: single TensorCore -> fold the batch


def _build_masks(H, W):
    """(8, H*W) f32 zero-padding masks of the 3x3 'same' conv (centre tap
    omitted), precomputed on the host; row order matches _TAPS sans centre."""
    HW = H * W
    p = np.arange(HW)
    py, px = p // W, p % W
    rows = np.zeros((KS * KS - 1, HW), np.float32)
    rr = 0
    for dy, dx in _TAPS:
        if dy == 0 and dx == 0:
            continue
        m = np.ones(HW, bool)
        if dy < 0:
            m &= py >= -dy
        elif dy > 0:
            m &= py < H - dy
        if dx < 0:
            m &= px >= -dx
        elif dx > 0:
            m &= px < W - dx
        rows[rr] = m
        rr += 1
    return jnp.asarray(rows)


def rcab_bn_4(x_nchw, kparams, images_per_step=None):
    """x_nchw: (N, C, H, W) float32.  kparams from fold_params().  Returns NCHW."""
    N, C, H, W = x_nchw.shape
    HW = H * W
    w1k, w2k, cst = kparams

    # Generation-aware grid shaping: one fat step on single-TC chips,
    # one image per ("parallel") grid step on multi-TC chips.
    if images_per_step is None:
        images_per_step = N if _tensorcores_per_chip() <= 1 else 1
    ips = max(1, min(int(images_per_step), N))
    while N % ips:
        ips -= 1
    G = N // ips

    x = x_nchw.reshape(G, ips, C, HW)        # free row-major collapse
    masks = _build_masks(H, W)               # trace-time constant, (8, HW)

    def full_spec(a):
        nd = a.ndim
        return pl.BlockSpec(a.shape, lambda g, _nd=nd: (0,) * _nd)

    out = pl.pallas_call(
        functools.partial(_rcab_kernel, W=W, images_per_step=ips),
        out_shape=jax.ShapeDtypeStruct((G, ips, C, HW), x_nchw.dtype),
        grid_spec=pltpu.PrefetchScalarGridSpec(
            num_scalar_prefetch=0,
            grid=(G,),
            in_specs=[
                pl.BlockSpec((1, ips, C, HW), lambda g: (g, 0, 0, 0)),
                full_spec(w1k), full_spec(w2k), full_spec(masks), full_spec(cst),
            ],
            out_specs=pl.BlockSpec((1, ips, C, HW), lambda g: (g, 0, 0, 0)),
        ),
        compiler_params=pltpu.CompilerParams(
            dimension_semantics=("parallel",) if G > 1 else ("arbitrary",)),
    )(x, w1k, w2k, masks, cst)

    return out.reshape(N, C, H, W)


def fold_params(params):
    """Fold BatchNorm (eval) + conv biases into bf16 conv weights in the
    lane-dense kernel layout and pack the remaining tiny tensors into one
    (16, 128) f32 constants block."""
    w1, b1, s1, t1, w2, b2, s2, t2, wdu1, bdu1, wdu2, bdu2 = params
    C = w1.shape[2]

    # conv1 + BN(12): s1*(conv(x,w1)+b1)+t1 == conv(x, w1*s1) + (s1*b1 + t1)
    w1k = (jnp.transpose(w1, (0, 1, 3, 2)).reshape(KS * KS, MID, C)
           * s1.reshape(1, MID, 1)).astype(jnp.bfloat16)         # (9, MID, C)
    t1k = (b1 * s1 + t1).reshape(MID)

    # conv2 + BN(C)
    w2k = (jnp.transpose(w2, (0, 1, 3, 2)).reshape(KS * KS, C, MID)
           * s2.reshape(1, C, 1)).astype(jnp.bfloat16)           # (9, C, MID)
    t2k = (b2 * s2 + t2).reshape(C)

    # One (16, 128) constants block (single DMA stream instead of six):
    #   lane 0,  rows 0..MID-1          : t1k    (read as (MID, 1))
    #   lane 1,  rows 0..C-1            : t2k    ((C, 1))
    #   lane 2,  rows 0..C-1            : bdu2   ((C, 1))
    #   lanes 16..16+MID-1, rows 0..C-1 : wdu1   ((C, MID))
    #   lanes 32..32+MID-1, rows 0..C-1 : wdu2^T ((C, MID))
    #   lanes 16..16+MID-1, row 8       : bdu1   ((1, MID))
    cst = jnp.zeros((16, 128), jnp.float32)
    cst = cst.at[0:MID, 0].set(t1k)
    cst = cst.at[0:C, 1].set(t2k)
    cst = cst.at[0:C, 2].set(bdu2.reshape(C))
    cst = cst.at[0:C, 16:16 + MID].set(wdu1)
    cst = cst.at[0:C, 32:32 + MID].set(wdu2.T)
    cst = cst.at[8, 16:16 + MID].set(bdu1.reshape(MID))

    return (w1k, w2k, cst)


def init_params(key, C):
    """Deterministic synthetic module parameters (conv weights stored HWIO)."""
    ks = jax.random.split(key, 16)
    eps = 1e-5

    w1 = 0.1 * jax.random.normal(ks[0], (KS, KS, C, MID), jnp.float32)
    b1 = 0.1 * jax.random.normal(ks[1], (1, MID), jnp.float32)
    g1 = 1.0 + 0.1 * jax.random.normal(ks[2], (MID,), jnp.float32)
    be1 = 0.1 * jax.random.normal(ks[3], (MID,), jnp.float32)
    m1 = 0.1 * jax.random.normal(ks[4], (MID,), jnp.float32)
    v1 = 0.5 + jax.random.uniform(ks[5], (MID,), jnp.float32)
    s1 = (g1 / jnp.sqrt(v1 + eps)).reshape(1, MID)
    t1 = (be1 - m1 * g1 / jnp.sqrt(v1 + eps)).reshape(1, MID)

    w2 = 0.1 * jax.random.normal(ks[6], (KS, KS, MID, C), jnp.float32)
    b2 = 0.1 * jax.random.normal(ks[7], (1, C), jnp.float32)
    g2 = 1.0 + 0.1 * jax.random.normal(ks[8], (C,), jnp.float32)
    be2 = 0.1 * jax.random.normal(ks[9], (C,), jnp.float32)
    m2 = 0.1 * jax.random.normal(ks[10], (C,), jnp.float32)
    v2 = 0.5 + jax.random.uniform(ks[11], (C,), jnp.float32)
    s2 = (g2 / jnp.sqrt(v2 + eps)).reshape(1, C)
    t2 = (be2 - m2 * g2 / jnp.sqrt(v2 + eps)).reshape(1, C)

    # CALayer_4: Conv2d(C, 12, 1) then Conv2d(12, C, 1); stored so that
    # (1,C) @ wdu1 -> (1,12) and (1,12) @ wdu2 -> (1,C).
    wdu1 = 0.2 * jax.random.normal(ks[12], (C, MID), jnp.float32)
    bdu1 = 0.1 * jax.random.normal(ks[13], (1, MID), jnp.float32)
    wdu2 = 0.2 * jax.random.normal(ks[14], (MID, C), jnp.float32)
    bdu2 = 0.1 * jax.random.normal(ks[15], (1, C), jnp.float32)

    return (w1, b1, s1, t1, w2, b2, s2, t2, wdu1, bdu1, wdu2, bdu2)


def reference(x_nchw, params):
    """Pure-JAX (XLA, f32) reference of RCAB_bn_4 forward for verification."""
    w1, b1, s1, t1, w2, b2, s2, t2, wdu1, bdu1, wdu2, bdu2 = params
    x = jnp.transpose(x_nchw, (0, 2, 3, 1))
    dn = ('NHWC', 'HWIO', 'NHWC')
    h = lax.conv_general_dilated(x, w1, (1, 1), 'SAME', dimension_numbers=dn)
    h = h + b1.reshape(1, 1, 1, -1)
    h = jnp.maximum(h * s1.reshape(1, 1, 1, -1) + t1.reshape(1, 1, 1, -1), 0.0)
    r = lax.conv_general_dilated(h, w2, (1, 1), 'SAME', dimension_numbers=dn)
    r = r + b2.reshape(1, 1, 1, -1)
    r = r * s2.reshape(1, 1, 1, -1) + t2.reshape(1, 1, 1, -1)
    y = jnp.mean(r, axis=(1, 2), keepdims=True)               # (N,1,1,C)
    z = jnp.maximum(jnp.einsum('nijc,cd->nijd', y, wdu1)
                    + bdu1.reshape(1, 1, 1, -1), 0.0)
    a = jax.nn.sigmoid(jnp.einsum('nijd,dc->nijc', z, wdu2)
                       + bdu2.reshape(1, 1, 1, -1))
    out = r * a + x
    return jnp.transpose(out, (0, 3, 1, 2))


if __name__ == "__main__":
    key = jax.random.PRNGKey(0)
    kx, kp = jax.random.split(key)

    N, C, H, W = 2, 4, 16, 16          # n_feat = 4
    x = jax.random.normal(kx, (N, C, H, W), jnp.float32)
    params = init_params(kp, C)
    kparams = fold_params(params)      # BN/bias folding + packing, once, outside jit

    out = jax.jit(rcab_bn_4)(x, kparams)
    out = jax.block_until_ready(out)

    ref = reference(x, params)
    assert out.shape == (N, C, H, W)
    err = float(jnp.max(jnp.abs(out - ref)))
    # Kernel uses bf16 MXU operands with f32 accumulation (per perf review),
    # so compare against the f32 reference with a bf16-appropriate tolerance.
    assert err < 3e-2, err

    print("KERNEL_OK")
</pallas_src>

<mosaic_0001>
module attributes {stable_mosaic.version = 11 : i64} {
  func.func @_rcab_kernel(%arg0: i32, %arg1: memref<1x2x4x256xf32, #tpu.memory_space<vmem>>, %arg2: memref<9x12x4xbf16, #tpu.memory_space<vmem>>, %arg3: memref<9x4x12xbf16, #tpu.memory_space<vmem>>, %arg4: memref<8x256xf32, #tpu.memory_space<vmem>>, %arg5: memref<16x128xf32, #tpu.memory_space<vmem>>, %arg6: memref<1x2x4x256xf32, #tpu.memory_space<vmem>>) attributes {dimension_semantics = [#tpu.dimension_semantics<arbitrary>], iteration_bounds = array<i64: 1>, scalar_prefetch = 0 : i64, scratch_operands = 0 : i64, tpu.core_type = #tpu.core_type<tc>, window_params = [{transform_indices = @transform_0, window_bounds = array<i64: 1, 2, 4, 256>}, {pipeline_mode = #tpu.pipeline_mode<synchronous>, transform_indices = @transform_1, window_bounds = array<i64: 9, 12, 4>}, {pipeline_mode = #tpu.pipeline_mode<synchronous>, transform_indices = @transform_2, window_bounds = array<i64: 9, 4, 12>}, {pipeline_mode = #tpu.pipeline_mode<synchronous>, transform_indices = @transform_3, window_bounds = array<i64: 8, 256>}, {pipeline_mode = #tpu.pipeline_mode<synchronous>, transform_indices = @transform_4, window_bounds = array<i64: 16, 128>}, {transform_indices = @transform_5, window_bounds = array<i64: 1, 2, 4, 256>}]} {
    %c0 = arith.constant 0 : index
    %c0_0 = arith.constant 0 : index
    %0 = vector.load %arg5[%c0, %c0_0] : memref<16x128xf32, #tpu.memory_space<vmem>>, vector<12x1xf32>
    %c0_1 = arith.constant 0 : index
    %c1 = arith.constant 1 : index
    %1 = vector.load %arg5[%c0_1, %c1] : memref<16x128xf32, #tpu.memory_space<vmem>>, vector<4x1xf32>
    %c0_2 = arith.constant 0 : index
    %c2 = arith.constant 2 : index
    %2 = vector.load %arg5[%c0_2, %c2] : memref<16x128xf32, #tpu.memory_space<vmem>>, vector<4x1xf32>
    %c0_3 = arith.constant 0 : index
    %c16 = arith.constant 16 : index
    %3 = vector.load %arg5[%c0_3, %c16] : memref<16x128xf32, #tpu.memory_space<vmem>>, vector<4x12xf32>
    %c0_4 = arith.constant 0 : index
    %c32 = arith.constant 32 : index
    %4 = vector.load %arg5[%c0_4, %c32] : memref<16x128xf32, #tpu.memory_space<vmem>>, vector<4x12xf32>
    %c8 = arith.constant 8 : index
    %c16_5 = arith.constant 16 : index
    %5 = vector.load %arg5[%c8, %c16_5] : memref<16x128xf32, #tpu.memory_space<vmem>>, vector<1x12xf32>
    %c0_6 = arith.constant 0 : index
    %c0_7 = arith.constant 0 : index
    %c0_8 = arith.constant 0 : index
    %c0_9 = arith.constant 0 : index
    %6 = vector.load %arg1[%c0_6, %c0_7, %c0_8, %c0_9] : memref<1x2x4x256xf32, #tpu.memory_space<vmem>>, vector<1x1x4x256xf32>
    %7 = vector.shape_cast %6 : vector<1x1x4x256xf32> to vector<4x256xf32>
    %8 = arith.truncf %7 : vector<4x256xf32> to vector<4x256xbf16>
    %c4 = arith.constant 4 : index
    %c0_10 = arith.constant 0 : index
    %c0_11 = arith.constant 0 : index
    %9 = vector.load %arg2[%c4, %c0_10, %c0_11] : memref<9x12x4xbf16, #tpu.memory_space<vmem>>, vector<1x12x4xbf16>
    %10 = vector.shape_cast %9 : vector<1x12x4xbf16> to vector<12x4xbf16>
    %cst = arith.constant dense<0.000000e+00> : vector<12x256xf32>
    %11 = tpu.matmul %10, %8, %cst {dimension_numbers = #tpu.dot_dimension_numbers<[1], [0], [0], [1], [0, 0, 1, 1], [], []>} : vector<12x4xbf16>, vector<4x256xbf16>, vector<12x256xf32> -> vector<12x256xf32>
    %c17_i32 = arith.constant 17 : i32
    %12 = tpu.dynamic_rotate %7 by %c17_i32 dim 1 : vector<4x256xf32>, i32 -> vector<4x256xf32>
    %c0_12 = arith.constant 0 : index
    %c0_13 = arith.constant 0 : index
    %13 = vector.load %arg4[%c0_12, %c0_13] : memref<8x256xf32, #tpu.memory_space<vmem>>, vector<1x256xf32>
    %14 = vector.broadcast %13 : vector<1x256xf32> to vector<4x256xf32>
    %15 = arith.mulf %12, %14 : vector<4x256xf32>
    %c0_14 = arith.constant 0 : index
    %c0_15 = arith.constant 0 : index
    %c0_16 = arith.constant 0 : index
    %16 = vector.load %arg2[%c0_14, %c0_15, %c0_16] : memref<9x12x4xbf16, #tpu.memory_space<vmem>>, vector<1x12x4xbf16>
    %17 = vector.shape_cast %16 : vector<1x12x4xbf16> to vector<12x4xbf16>
    %18 = arith.truncf %15 : vector<4x256xf32> to vector<4x256xbf16>
    %cst_17 = arith.constant dense<0.000000e+00> : vector<12x256xf32>
    %19 = tpu.matmul %17, %18, %cst_17 {dimension_numbers = #tpu.dot_dimension_numbers<[1], [0], [0], [1], [0, 0, 1, 1], [], []>} : vector<12x4xbf16>, vector<4x256xbf16>, vector<12x256xf32> -> vector<12x256xf32>
    %20 = arith.addf %11, %19 : vector<12x256xf32>
    %c16_i32 = arith.constant 16 : i32
    %21 = tpu.dynamic_rotate %7 by %c16_i32 dim 1 : vector<4x256xf32>, i32 -> vector<4x256xf32>
    %c1_18 = arith.constant 1 : index
    %c0_19 = arith.constant 0 : index
    %22 = vector.load %arg4[%c1_18, %c0_19] : memref<8x256xf32, #tpu.memory_space<vmem>>, vector<1x256xf32>
    %23 = vector.broadcast %22 : vector<1x256xf32> to vector<4x256xf32>
    %24 = arith.mulf %21, %23 : vector<4x256xf32>
    %c1_20 = arith.constant 1 : index
    %c0_21 = arith.constant 0 : index
    %c0_22 = arith.constant 0 : index
    %25 = vector.load %arg2[%c1_20, %c0_21, %c0_22] : memref<9x12x4xbf16, #tpu.memory_space<vmem>>, vector<1x12x4xbf16>
    %26 = vector.shape_cast %25 : vector<1x12x4xbf16> to vector<12x4xbf16>
    %27 = arith.truncf %24 : vector<4x256xf32> to vector<4x256xbf16>
    %cst_23 = arith.constant dense<0.000000e+00> : vector<12x256xf32>
    %28 = tpu.matmul %26, %27, %cst_23 {dimension_numbers = #tpu.dot_dimension_numbers<[1], [0], [0], [1], [0, 0, 1, 1], [], []>} : vector<12x4xbf16>, vector<4x256xbf16>, vector<12x256xf32> -> vector<12x256xf32>
    %29 = arith.addf %20, %28 : vector<12x256xf32>
    %c15_i32 = arith.constant 15 : i32
    %30 = tpu.dynamic_rotate %7 by %c15_i32 dim 1 : vector<4x256xf32>, i32 -> vector<4x256xf32>
    %c2_24 = arith.constant 2 : index
    %c0_25 = arith.constant 0 : index
    %31 = vector.load %arg4[%c2_24, %c0_25] : memref<8x256xf32, #tpu.memory_space<vmem>>, vector<1x256xf32>
    %32 = vector.broadcast %31 : vector<1x256xf32> to vector<4x256xf32>
    %33 = arith.mulf %30, %32 : vector<4x256xf32>
    %c2_26 = arith.constant 2 : index
    %c0_27 = arith.constant 0 : index
    %c0_28 = arith.constant 0 : index
    %34 = vector.load %arg2[%c2_26, %c0_27, %c0_28] : memref<9x12x4xbf16, #tpu.memory_space<vmem>>, vector<1x12x4xbf16>
    %35 = vector.shape_cast %34 : vector<1x12x4xbf16> to vector<12x4xbf16>
    %36 = arith.truncf %33 : vector<4x256xf32> to vector<4x256xbf16>
    %cst_29 = arith.constant dense<0.000000e+00> : vector<12x256xf32>
    %37 = tpu.matmul %35, %36, %cst_29 {dimension_numbers = #tpu.dot_dimension_numbers<[1], [0], [0], [1], [0, 0, 1, 1], [], []>} : vector<12x4xbf16>, vector<4x256xbf16>, vector<12x256xf32> -> vector<12x256xf32>
    %38 = arith.addf %29, %37 : vector<12x256xf32>
    %c1_i32 = arith.constant 1 : i32
    %39 = tpu.dynamic_rotate %7 by %c1_i32 dim 1 : vector<4x256xf32>, i32 -> vector<4x256xf32>
    %c3 = arith.constant 3 : index
    %c0_30 = arith.constant 0 : index
    %40 = vector.load %arg4[%c3, %c0_30] : memref<8x256xf32, #tpu.memory_space<vmem>>, vector<1x256xf32>
    %41 = vector.broadcast %40 : vector<1x256xf32> to vector<4x256xf32>
    %42 = arith.mulf %39, %41 : vector<4x256xf32>
    %c3_31 = arith.constant 3 : index
    %c0_32 = arith.constant 0 : index
    %c0_33 = arith.constant 0 : index
    %43 = vector.load %arg2[%c3_31, %c0_32, %c0_33] : memref<9x12x4xbf16, #tpu.memory_space<vmem>>, vector<1x12x4xbf16>
    %44 = vector.shape_cast %43 : vector<1x12x4xbf16> to vector<12x4xbf16>
    %45 = arith.truncf %42 : vector<4x256xf32> to vector<4x256xbf16>
    %cst_34 = arith.constant dense<0.000000e+00> : vector<12x256xf32>
    %46 = tpu.matmul %44, %45, %cst_34 {dimension_numbers = #tpu.dot_dimension_numbers<[1], [0], [0], [1], [0, 0, 1, 1], [], []>} : vector<12x4xbf16>, vector<4x256xbf16>, vector<12x256xf32> -> vector<12x256xf32>
    %47 = arith.addf %38, %46 : vector<12x256xf32>
    %c255_i32 = arith.constant 255 : i32
    %48 = tpu.dynamic_rotate %7 by %c255_i32 dim 1 : vector<4x256xf32>, i32 -> vector<4x256xf32>
    %c4_35 = arith.constant 4 : index
    %c0_36 = arith.constant 0 : index
    %49 = vector.load %arg4[%c4_35, %c0_36] : memref<8x256xf32, #tpu.memory_space<vmem>>, vector<1x256xf32>
    %50 = vector.broadcast %49 : vector<1x256xf32> to vector<4x256xf32>
    %51 = arith.mulf %48, %50 : vector<4x256xf32>
    %c5 = arith.constant 5 : index
    %c0_37 = arith.constant 0 : index
    %c0_38 = arith.constant 0 : index
    %52 = vector.load %arg2[%c5, %c0_37, %c0_38] : memref<9x12x4xbf16, #tpu.memory_space<vmem>>, vector<1x12x4xbf16>
    %53 = vector.shape_cast %52 : vector<1x12x4xbf16> to vector<12x4xbf16>
    %54 = arith.truncf %51 : vector<4x256xf32> to vector<4x256xbf16>
    %cst_39 = arith.constant dense<0.000000e+00> : vector<12x256xf32>
    %55 = tpu.matmul %53, %54, %cst_39 {dimension_numbers = #tpu.dot_dimension_numbers<[1], [0], [0], [1], [0, 0, 1, 1], [], []>} : vector<12x4xbf16>, vector<4x256xbf16>, vector<12x256xf32> -> vector<12x256xf32>
    %56 = arith.addf %47, %55 : vector<12x256xf32>
    %c241_i32 = arith.constant 241 : i32
    %57 = tpu.dynamic_rotate %7 by %c241_i32 dim 1 : vector<4x256xf32>, i32 -> vector<4x256xf32>
    %c5_40 = arith.constant 5 : index
    %c0_41 = arith.constant 0 : index
    %58 = vector.load %arg4[%c5_40, %c0_41] : memref<8x256xf32, #tpu.memory_space<vmem>>, vector<1x256xf32>
    %59 = vector.broadcast %58 : vector<1x256xf32> to vector<4x256xf32>
    %60 = arith.mulf %57, %59 : vector<4x256xf32>
    %c6 = arith.constant 6 : index
    %c0_42 = arith.constant 0 : index
    %c0_43 = arith.constant 0 : index
    %61 = vector.load %arg2[%c6, %c0_42, %c0_43] : memref<9x12x4xbf16, #tpu.memory_space<vmem>>, vector<1x12x4xbf16>
    %62 = vector.shape_cast %61 : vector<1x12x4xbf16> to vector<12x4xbf16>
    %63 = arith.truncf %60 : vector<4x256xf32> to vector<4x256xbf16>
    %cst_44 = arith.constant dense<0.000000e+00> : vector<12x256xf32>
    %64 = tpu.matmul %62, %63, %cst_44 {dimension_numbers = #tpu.dot_dimension_numbers<[1], [0], [0], [1], [0, 0, 1, 1], [], []>} : vector<12x4xbf16>, vector<4x256xbf16>, vector<12x256xf32> -> vector<12x256xf32>
    %65 = arith.addf %56, %64 : vector<12x256xf32>
    %c240_i32 = arith.constant 240 : i32
    %66 = tpu.dynamic_rotate %7 by %c240_i32 dim 1 : vector<4x256xf32>, i32 -> vector<4x256xf32>
    %c6_45 = arith.constant 6 : index
    %c0_46 = arith.constant 0 : index
    %67 = vector.load %arg4[%c6_45, %c0_46] : memref<8x256xf32, #tpu.memory_space<vmem>>, vector<1x256xf32>
    %68 = vector.broadcast %67 : vector<1x256xf32> to vector<4x256xf32>
    %69 = arith.mulf %66, %68 : vector<4x256xf32>
    %c7 = arith.constant 7 : index
    %c0_47 = arith.constant 0 : index
    %c0_48 = arith.constant 0 : index
    %70 = vector.load %arg2[%c7, %c0_47, %c0_48] : memref<9x12x4xbf16, #tpu.memory_space<vmem>>, vector<1x12x4xbf16>
    %71 = vector.shape_cast %70 : vector<1x12x4xbf16> to vector<12x4xbf16>
    %72 = arith.truncf %69 : vector<4x256xf32> to vector<4x256xbf16>
    %cst_49 = arith.constant dense<0.000000e+00> : vector<12x256xf32>
    %73 = tpu.matmul %71, %72, %cst_49 {dimension_numbers = #tpu.dot_dimension_numbers<[1], [0], [0], [1], [0, 0, 1, 1], [], []>} : vector<12x4xbf16>, vector<4x256xbf16>, vector<12x256xf32> -> vector<12x256xf32>
    %74 = arith.addf %65, %73 : vector<12x256xf32>
    %c239_i32 = arith.constant 239 : i32
    %75 = tpu.dynamic_rotate %7 by %c239_i32 dim 1 : vector<4x256xf32>, i32 -> vector<4x256xf32>
    %c7_50 = arith.constant 7 : index
    %c0_51 = arith.constant 0 : index
    %76 = vector.load %arg4[%c7_50, %c0_51] : memref<8x256xf32, #tpu.memory_space<vmem>>, vector<1x256xf32>
    %77 = vector.broadcast %76 : vector<1x256xf32> to vector<4x256xf32>
    %78 = arith.mulf %75, %77 : vector<4x256xf32>
    %c8_52 = arith.constant 8 : index
    %c0_53 = arith.constant 0 : index
    %c0_54 = arith.constant 0 : index
    %79 = vector.load %arg2[%c8_52, %c0_53, %c0_54] : memref<9x12x4xbf16, #tpu.memory_space<vmem>>, vector<1x12x4xbf16>
    %80 = vector.shape_cast %79 : vector<1x12x4xbf16> to vector<12x4xbf16>
    %81 = arith.truncf %78 : vector<4x256xf32> to vector<4x256xbf16>
    %cst_55 = arith.constant dense<0.000000e+00> : vector<12x256xf32>
    %82 = tpu.matmul %80, %81, %cst_55 {dimension_numbers = #tpu.dot_dimension_numbers<[1], [0], [0], [1], [0, 0, 1, 1], [], []>} : vector<12x4xbf16>, vector<4x256xbf16>, vector<12x256xf32> -> vector<12x256xf32>
    %83 = arith.addf %74, %82 : vector<12x256xf32>
    %84 = vector.broadcast %0 : vector<12x1xf32> to vector<12x256xf32>
    %85 = arith.addf %83, %84 : vector<12x256xf32>
    %cst_56 = arith.constant 0.000000e+00 : f32
    %86 = vector.broadcast %cst_56 : f32 to vector<12x256xf32>
    %87 = arith.maximumf %85, %86 : vector<12x256xf32>
    %88 = arith.truncf %87 : vector<12x256xf32> to vector<12x256xbf16>
    %c4_57 = arith.constant 4 : index
    %c0_58 = arith.constant 0 : index
    %c0_59 = arith.constant 0 : index
    %89 = vector.load %arg3[%c4_57, %c0_58, %c0_59] : memref<9x4x12xbf16, #tpu.memory_space<vmem>>, vector<1x4x12xbf16>
    %90 = vector.shape_cast %89 : vector<1x4x12xbf16> to vector<4x12xbf16>
    %cst_60 = arith.constant dense<0.000000e+00> : vector<4x256xf32>
    %91 = tpu.matmul %90, %88, %cst_60 {dimension_numbers = #tpu.dot_dimension_numbers<[1], [0], [0], [1], [0, 0, 1, 1], [], []>} : vector<4x12xbf16>, vector<12x256xbf16>, vector<4x256xf32> -> vector<4x256xf32>
    %c0_61 = arith.constant 0 : index
    %c0_62 = arith.constant 0 : index
    %c0_63 = arith.constant 0 : index
    %92 = vector.load %arg3[%c0_61, %c0_62, %c0_63] : memref<9x4x12xbf16, #tpu.memory_space<vmem>>, vector<1x4x12xbf16>
    %93 = vector.shape_cast %92 : vector<1x4x12xbf16> to vector<4x12xbf16>
    %cst_64 = arith.constant dense<0.000000e+00> : vector<4x256xf32>
    %94 = tpu.matmul %93, %88, %cst_64 {dimension_numbers = #tpu.dot_dimension_numbers<[1], [0], [0], [1], [0, 0, 1, 1], [], []>} : vector<4x12xbf16>, vector<12x256xbf16>, vector<4x256xf32> -> vector<4x256xf32>
    %c17_i32_65 = arith.constant 17 : i32
    %95 = tpu.dynamic_rotate %94 by %c17_i32_65 dim 1 : vector<4x256xf32>, i32 -> vector<4x256xf32>
    %c0_66 = arith.constant 0 : index
    %c0_67 = arith.constant 0 : index
    %96 = vector.load %arg4[%c0_66, %c0_67] : memref<8x256xf32, #tpu.memory_space<vmem>>, vector<1x256xf32>
    %97 = vector.broadcast %96 : vector<1x256xf32> to vector<4x256xf32>
    %98 = arith.mulf %95, %97 : vector<4x256xf32>
    %99 = arith.addf %91, %98 : vector<4x256xf32>
    %c1_68 = arith.constant 1 : index
    %c0_69 = arith.constant 0 : index
    %c0_70 = arith.constant 0 : index
    %100 = vector.load %arg3[%c1_68, %c0_69, %c0_70] : memref<9x4x12xbf16, #tpu.memory_space<vmem>>, vector<1x4x12xbf16>
    %101 = vector.shape_cast %100 : vector<1x4x12xbf16> to vector<4x12xbf16>
    %cst_71 = arith.constant dense<0.000000e+00> : vector<4x256xf32>
    %102 = tpu.matmul %101, %88, %cst_71 {dimension_numbers = #tpu.dot_dimension_numbers<[1], [0], [0], [1], [0, 0, 1, 1], [], []>} : vector<4x12xbf16>, vector<12x256xbf16>, vector<4x256xf32> -> vector<4x256xf32>
    %c16_i32_72 = arith.constant 16 : i32
    %103 = tpu.dynamic_rotate %102 by %c16_i32_72 dim 1 : vector<4x256xf32>, i32 -> vector<4x256xf32>
    %c1_73 = arith.constant 1 : index
    %c0_74 = arith.constant 0 : index
    %104 = vector.load %arg4[%c1_73, %c0_74] : memref<8x256xf32, #tpu.memory_space<vmem>>, vector<1x256xf32>
    %105 = vector.broadcast %104 : vector<1x256xf32> to vector<4x256xf32>
    %106 = arith.mulf %103, %105 : vector<4x256xf32>
    %107 = arith.addf %99, %106 : vector<4x256xf32>
    %c2_75 = arith.constant 2 : index
    %c0_76 = arith.constant 0 : index
    %c0_77 = arith.constant 0 : index
    %108 = vector.load %arg3[%c2_75, %c0_76, %c0_77] : memref<9x4x12xbf16, #tpu.memory_space<vmem>>, vector<1x4x12xbf16>
    %109 = vector.shape_cast %108 : vector<1x4x12xbf16> to vector<4x12xbf16>
    %cst_78 = arith.constant dense<0.000000e+00> : vector<4x256xf32>
    %110 = tpu.matmul %109, %88, %cst_78 {dimension_numbers = #tpu.dot_dimension_numbers<[1], [0], [0], [1], [0, 0, 1, 1], [], []>} : vector<4x12xbf16>, vector<12x256xbf16>, vector<4x256xf32> -> vector<4x256xf32>
    %c15_i32_79 = arith.constant 15 : i32
    %111 = tpu.dynamic_rotate %110 by %c15_i32_79 dim 1 : vector<4x256xf32>, i32 -> vector<4x256xf32>
    %c2_80 = arith.constant 2 : index
    %c0_81 = arith.constant 0 : index
    %112 = vector.load %arg4[%c2_80, %c0_81] : memref<8x256xf32, #tpu.memory_space<vmem>>, vector<1x256xf32>
    %113 = vector.broadcast %112 : vector<1x256xf32> to vector<4x256xf32>
    %114 = arith.mulf %111, %113 : vector<4x256xf32>
    %115 = arith.addf %107, %114 : vector<4x256xf32>
    %c3_82 = arith.constant 3 : index
    %c0_83 = arith.constant 0 : index
    %c0_84 = arith.constant 0 : index
    %116 = vector.load %arg3[%c3_82, %c0_83, %c0_84] : memref<9x4x12xbf16, #tpu.memory_space<vmem>>, vector<1x4x12xbf16>
    %117 = vector.shape_cast %116 : vector<1x4x12xbf16> to vector<4x12xbf16>
    %cst_85 = arith.constant dense<0.000000e+00> : vector<4x256xf32>
    %118 = tpu.matmul %117, %88, %cst_85 {dimension_numbers = #tpu.dot_dimension_numbers<[1], [0], [0], [1], [0, 0, 1, 1], [], []>} : vector<4x12xbf16>, vector<12x256xbf16>, vector<4x256xf32> -> vector<4x256xf32>
    %c1_i32_86 = arith.constant 1 : i32
    %119 = tpu.dynamic_rotate %118 by %c1_i32_86 dim 1 : vector<4x256xf32>, i32 -> vector<4x256xf32>
    %c3_87 = arith.constant 3 : index
    %c0_88 = arith.constant 0 : index
    %120 = vector.load %arg4[%c3_87, %c0_88] : memref<8x256xf32, #tpu.memory_space<vmem>>, vector<1x256xf32>
    %121 = vector.broadcast %120 : vector<1x256xf32> to vector<4x256xf32>
    %122 = arith.mulf %119, %121 : vector<4x256xf32>
    %123 = arith.addf %115, %122 : vector<4x256xf32>
    %c5_89 = arith.constant 5 : index
    %c0_90 = arith.constant 0 : index
    %c0_91 = arith.constant 0 : index
    %124 = vector.load %arg3[%c5_89, %c0_90, %c0_91] : memref<9x4x12xbf16, #tpu.memory_space<vmem>>, vector<1x4x12xbf16>
    %125 = vector.shape_cast %124 : vector<1x4x12xbf16> to vector<4x12xbf16>
    %cst_92 = arith.constant dense<0.000000e+00> : vector<4x256xf32>
    %126 = tpu.matmul %125, %88, %cst_92 {dimension_numbers = #tpu.dot_dimension_numbers<[1], [0], [0], [1], [0, 0, 1, 1], [], []>} : vector<4x12xbf16>, vector<12x256xbf16>, vector<4x256xf32> -> vector<4x256xf32>
    %c255_i32_93 = arith.constant 255 : i32
    %127 = tpu.dynamic_rotate %126 by %c255_i32_93 dim 1 : vector<4x256xf32>, i32 -> vector<4x256xf32>
    %c4_94 = arith.constant 4 : index
    %c0_95 = arith.constant 0 : index
    %128 = vector.load %arg4[%c4_94, %c0_95] : memref<8x256xf32, #tpu.memory_space<vmem>>, vector<1x256xf32>
    %129 = vector.broadcast %128 : vector<1x256xf32> to vector<4x256xf32>
    %130 = arith.mulf %127, %129 : vector<4x256xf32>
    %131 = arith.addf %123, %130 : vector<4x256xf32>
    %c6_96 = arith.constant 6 : index
    %c0_97 = arith.constant 0 : index
    %c0_98 = arith.constant 0 : index
    %132 = vector.load %arg3[%c6_96, %c0_97, %c0_98] : memref<9x4x12xbf16, #tpu.memory_space<vmem>>, vector<1x4x12xbf16>
    %133 = vector.shape_cast %132 : vector<1x4x12xbf16> to vector<4x12xbf16>
    %cst_99 = arith.constant dense<0.000000e+00> : vector<4x256xf32>
    %134 = tpu.matmul %133, %88, %cst_99 {dimension_numbers = #tpu.dot_dimension_numbers<[1], [0], [0], [1], [0, 0, 1, 1], [], []>} : vector<4x12xbf16>, vector<12x256xbf16>, vector<4x256xf32> -> vector<4x256xf32>
    %c241_i32_100 = arith.constant 241 : i32
    %135 = tpu.dynamic_rotate %134 by %c241_i32_100 dim 1 : vector<4x256xf32>, i32 -> vector<4x256xf32>
    %c5_101 = arith.constant 5 : index
    %c0_102 = arith.constant 0 : index
    %136 = vector.load %arg4[%c5_101, %c0_102] : memref<8x256xf32, #tpu.memory_space<vmem>>, vector<1x256xf32>
    %137 = vector.broadcast %136 : vector<1x256xf32> to vector<4x256xf32>
    %138 = arith.mulf %135, %137 : vector<4x256xf32>
    %139 = arith.addf %131, %138 : vector<4x256xf32>
    %c7_103 = arith.constant 7 : index
    %c0_104 = arith.constant 0 : index
    %c0_105 = arith.constant 0 : index
    %140 = vector.load %arg3[%c7_103, %c0_104, %c0_105] : memref<9x4x12xbf16, #tpu.memory_space<vmem>>, vector<1x4x12xbf16>
    %141 = vector.shape_cast %140 : vector<1x4x12xbf16> to vector<4x12xbf16>
    %cst_106 = arith.constant dense<0.000000e+00> : vector<4x256xf32>
    %142 = tpu.matmul %141, %88, %cst_106 {dimension_numbers = #tpu.dot_dimension_numbers<[1], [0], [0], [1], [0, 0, 1, 1], [], []>} : vector<4x12xbf16>, vector<12x256xbf16>, vector<4x256xf32> -> vector<4x256xf32>
    %c240_i32_107 = arith.constant 240 : i32
    %143 = tpu.dynamic_rotate %142 by %c240_i32_107 dim 1 : vector<4x256xf32>, i32 -> vector<4x256xf32>
    %c6_108 = arith.constant 6 : index
    %c0_109 = arith.constant 0 : index
    %144 = vector.load %arg4[%c6_108, %c0_109] : memref<8x256xf32, #tpu.memory_space<vmem>>, vector<1x256xf32>
    %145 = vector.broadcast %144 : vector<1x256xf32> to vector<4x256xf32>
    %146 = arith.mulf %143, %145 : vector<4x256xf32>
    %147 = arith.addf %139, %146 : vector<4x256xf32>
    %c8_110 = arith.constant 8 : index
    %c0_111 = arith.constant 0 : index
    %c0_112 = arith.constant 0 : index
    %148 = vector.load %arg3[%c8_110, %c0_111, %c0_112] : memref<9x4x12xbf16, #tpu.memory_space<vmem>>, vector<1x4x12xbf16>
    %149 = vector.shape_cast %148 : vector<1x4x12xbf16> to vector<4x12xbf16>
    %cst_113 = arith.constant dense<0.000000e+00> : vector<4x256xf32>
    %150 = tpu.matmul %149, %88, %cst_113 {dimension_numbers = #tpu.dot_dimension_numbers<[1], [0], [0], [1], [0, 0, 1, 1], [], []>} : vector<4x12xbf16>, vector<12x256xbf16>, vector<4x256xf32> -> vector<4x256xf32>
    %c239_i32_114 = arith.constant 239 : i32
    %151 = tpu.dynamic_rotate %150 by %c239_i32_114 dim 1 : vector<4x256xf32>, i32 -> vector<4x256xf32>
    %c7_115 = arith.constant 7 : index
    %c0_116 = arith.constant 0 : index
    %152 = vector.load %arg4[%c7_115, %c0_116] : memref<8x256xf32, #tpu.memory_space<vmem>>, vector<1x256xf32>
    %153 = vector.broadcast %152 : vector<1x256xf32> to vector<4x256xf32>
    %154 = arith.mulf %151, %153 : vector<4x256xf32>
    %155 = arith.addf %147, %154 : vector<4x256xf32>
    %156 = vector.broadcast %1 : vector<4x1xf32> to vector<4x256xf32>
    %157 = arith.addf %155, %156 : vector<4x256xf32>
    %cst_117 = arith.constant dense<0.000000e+00> : vector<4xf32>
    %158 = vector.multi_reduction <add>, %157, %cst_117 [1] : vector<4x256xf32> to vector<4xf32>
    %159 = vector.shape_cast %158 : vector<4xf32> to vector<4x1xf32>
    %cst_118 = arith.constant 3.906250e-03 : f32
    %160 = vector.broadcast %cst_118 : f32 to vector<4x1xf32>
    %161 = arith.mulf %159, %160 : vector<4x1xf32>
    %162 = vector.broadcast %161 : vector<4x1xf32> to vector<4x12xf32>
    %163 = arith.mulf %3, %162 : vector<4x12xf32>
    %cst_119 = arith.constant dense<0.000000e+00> : vector<12xf32>
    %164 = vector.multi_reduction <add>, %163, %cst_119 [0] : vector<4x12xf32> to vector<12xf32>
    %165 = vector.shape_cast %164 : vector<12xf32> to vector<1x12xf32>
    %166 = arith.addf %165, %5 : vector<1x12xf32>
    %cst_120 = arith.constant 0.000000e+00 : f32
    %167 = vector.broadcast %cst_120 : f32 to vector<1x12xf32>
    %168 = arith.maximumf %166, %167 : vector<1x12xf32>
    %169 = vector.broadcast %168 : vector<1x12xf32> to vector<4x12xf32>
    %170 = arith.mulf %4, %169 : vector<4x12xf32>
    %cst_121 = arith.constant dense<0.000000e+00> : vector<4xf32>
    %171 = vector.multi_reduction <add>, %170, %cst_121 [1] : vector<4x12xf32> to vector<4xf32>
    %172 = vector.shape_cast %171 : vector<4xf32> to vector<4x1xf32>
    %173 = arith.addf %172, %2 : vector<4x1xf32>
    %174 = arith.negf %173 : vector<4x1xf32>
    %175 = math.exp %174 : vector<4x1xf32>
    %cst_122 = arith.constant 1.000000e+00 : f32
    %176 = vector.broadcast %cst_122 : f32 to vector<4x1xf32>
    %177 = arith.addf %176, %175 : vector<4x1xf32>
    %178 = arith.divf %176, %177 : vector<4x1xf32>
    %179 = vector.broadcast %178 : vector<4x1xf32> to vector<4x256xf32>
    %180 = arith.mulf %157, %179 : vector<4x256xf32>
    %181 = arith.addf %180, %7 : vector<4x256xf32>
    %c0_123 = arith.constant 0 : index
    %c0_124 = arith.constant 0 : index
    %c0_125 = arith.constant 0 : index
    %c0_126 = arith.constant 0 : index
    %182 = vector.load %arg6[%c0_123, %c0_124, %c0_125, %c0_126] : memref<1x2x4x256xf32, #tpu.memory_space<vmem>>, vector<1x1x4x256xf32>
    %183 = vector.shape_cast %182 : vector<1x1x4x256xf32> to vector<4x256xf32>
    %184 = vector.shape_cast %181 : vector<4x256xf32> to vector<1x1x4x256xf32>
    tpu.vector_store %arg6[%c0_123, %c0_124, %c0_125, %c0_126], %184 {strides = array<i32>} : memref<1x2x4x256xf32, #tpu.memory_space<vmem>>, vector<1x1x4x256xf32>,
    %c0_127 = arith.constant 0 : index
    %c1_128 = arith.constant 1 : index
    %c0_129 = arith.constant 0 : index
    %c0_130 = arith.constant 0 : index
    %185 = vector.load %arg1[%c0_127, %c1_128, %c0_129, %c0_130] : memref<1x2x4x256xf32, #tpu.memory_space<vmem>>, vector<1x1x4x256xf32>
    %186 = vector.shape_cast %185 : vector<1x1x4x256xf32> to vector<4x256xf32>
    %187 = arith.truncf %186 : vector<4x256xf32> to vector<4x256xbf16>
    %c4_131 = arith.constant 4 : index
    %c0_132 = arith.constant 0 : index
    %c0_133 = arith.constant 0 : index
    %188 = vector.load %arg2[%c4_131, %c0_132, %c0_133] : memref<9x12x4xbf16, #tpu.memory_space<vmem>>, vector<1x12x4xbf16>
    %189 = vector.shape_cast %188 : vector<1x12x4xbf16> to vector<12x4xbf16>
    %cst_134 = arith.constant dense<0.000000e+00> : vector<12x256xf32>
    %190 = tpu.matmul %189, %187, %cst_134 {dimension_numbers = #tpu.dot_dimension_numbers<[1], [0], [0], [1], [0, 0, 1, 1], [], []>} : vector<12x4xbf16>, vector<4x256xbf16>, vector<12x256xf32> -> vector<12x256xf32>
    %c17_i32_135 = arith.constant 17 : i32
    %191 = tpu.dynamic_rotate %186 by %c17_i32_135 dim 1 : vector<4x256xf32>, i32 -> vector<4x256xf32>
    %c0_136 = arith.constant 0 : index
    %c0_137 = arith.constant 0 : index
    %192 = vector.load %arg4[%c0_136, %c0_137] : memref<8x256xf32, #tpu.memory_space<vmem>>, vector<1x256xf32>
    %193 = vector.broadcast %192 : vector<1x256xf32> to vector<4x256xf32>
    %194 = arith.mulf %191, %193 : vector<4x256xf32>
    %c0_138 = arith.constant 0 : index
    %c0_139 = arith.constant 0 : index
    %c0_140 = arith.constant 0 : index
    %195 = vector.load %arg2[%c0_138, %c0_139, %c0_140] : memref<9x12x4xbf16, #tpu.memory_space<vmem>>, vector<1x12x4xbf16>
    %196 = vector.shape_cast %195 : vector<1x12x4xbf16> to vector<12x4xbf16>
    %197 = arith.truncf %194 : vector<4x256xf32> to vector<4x256xbf16>
    %cst_141 = arith.constant dense<0.000000e+00> : vector<12x256xf32>
    %198 = tpu.matmul %196, %197, %cst_141 {dimension_numbers = #tpu.dot_dimension_numbers<[1], [0], [0], [1], [0, 0, 1, 1], [], []>} : vector<12x4xbf16>, vector<4x256xbf16>, vector<12x256xf32> -> vector<12x256xf32>
    %199 = arith.addf %190, %198 : vector<12x256xf32>
    %c16_i32_142 = arith.constant 16 : i32
    %200 = tpu.dynamic_rotate %186 by %c16_i32_142 dim 1 : vector<4x256xf32>, i32 -> vector<4x256xf32>
    %c1_143 = arith.constant 1 : index
    %c0_144 = arith.constant 0 : index
    %201 = vector.load %arg4[%c1_143, %c0_144] : memref<8x256xf32, #tpu.memory_space<vmem>>, vector<1x256xf32>
    %202 = vector.broadcast %201 : vector<1x256xf32> to vector<4x256xf32>
    %203 = arith.mulf %200, %202 : vector<4x256xf32>
    %c1_145 = arith.constant 1 : index
    %c0_146 = arith.constant 0 : index
    %c0_147 = arith.constant 0 : index
    %204 = vector.load %arg2[%c1_145, %c0_146, %c0_147] : memref<9x12x4xbf16, #tpu.memory_space<vmem>>, vector<1x12x4xbf16>
    %205 = vector.shape_cast %204 : vector<1x12x4xbf16> to vector<12x4xbf16>
    %206 = arith.truncf %203 : vector<4x256xf32> to vector<4x256xbf16>
    %cst_148 = arith.constant dense<0.000000e+00> : vector<12x256xf32>
    %207 = tpu.matmul %205, %206, %cst_148 {dimension_numbers = #tpu.dot_dimension_numbers<[1], [0], [0], [1], [0, 0, 1, 1], [], []>} : vector<12x4xbf16>, vector<4x256xbf16>, vector<12x256xf32> -> vector<12x256xf32>
    %208 = arith.addf %199, %207 : vector<12x256xf32>
    %c15_i32_149 = arith.constant 15 : i32
    %209 = tpu.dynamic_rotate %186 by %c15_i32_149 dim 1 : vector<4x256xf32>, i32 -> vector<4x256xf32>
    %c2_150 = arith.constant 2 : index
    %c0_151 = arith.constant 0 : index
    %210 = vector.load %arg4[%c2_150, %c0_151] : memref<8x256xf32, #tpu.memory_space<vmem>>, vector<1x256xf32>
    %211 = vector.broadcast %210 : vector<1x256xf32> to vector<4x256xf32>
    %212 = arith.mulf %209, %211 : vector<4x256xf32>
    %c2_152 = arith.constant 2 : index
    %c0_153 = arith.constant 0 : index
    %c0_154 = arith.constant 0 : index
    %213 = vector.load %arg2[%c2_152, %c0_153, %c0_154] : memref<9x12x4xbf16, #tpu.memory_space<vmem>>, vector<1x12x4xbf16>
    %214 = vector.shape_cast %213 : vector<1x12x4xbf16> to vector<12x4xbf16>
    %215 = arith.truncf %212 : vector<4x256xf32> to vector<4x256xbf16>
    %cst_155 = arith.constant dense<0.000000e+00> : vector<12x256xf32>
    %216 = tpu.matmul %214, %215, %cst_155 {dimension_numbers = #tpu.dot_dimension_numbers<[1], [0], [0], [1], [0, 0, 1, 1], [], []>} : vector<12x4xbf16>, vector<4x256xbf16>, vector<12x256xf32> -> vector<12x256xf32>
    %217 = arith.addf %208, %216 : vector<12x256xf32>
    %c1_i32_156 = arith.constant 1 : i32
    %218 = tpu.dynamic_rotate %186 by %c1_i32_156 dim 1 : vector<4x256xf32>, i32 -> vector<4x256xf32>
    %c3_157 = arith.constant 3 : index
    %c0_158 = arith.constant 0 : index
    %219 = vector.load %arg4[%c3_157, %c0_158] : memref<8x256xf32, #tpu.memory_space<vmem>>, vector<1x256xf32>
    %220 = vector.broadcast %219 : vector<1x256xf32> to vector<4x256xf32>
    %221 = arith.mulf %218, %220 : vector<4x256xf32>
    %c3_159 = arith.constant 3 : index
    %c0_160 = arith.constant 0 : index
    %c0_161 = arith.constant 0 : index
    %222 = vector.load %arg2[%c3_159, %c0_160, %c0_161] : memref<9x12x4xbf16, #tpu.memory_space<vmem>>, vector<1x12x4xbf16>
    %223 = vector.shape_cast %222 : vector<1x12x4xbf16> to vector<12x4xbf16>
    %224 = arith.truncf %221 : vector<4x256xf32> to vector<4x256xbf16>
    %cst_162 = arith.constant dense<0.000000e+00> : vector<12x256xf32>
    %225 = tpu.matmul %223, %224, %cst_162 {dimension_numbers = #tpu.dot_dimension_numbers<[1], [0], [0], [1], [0, 0, 1, 1], [], []>} : vector<12x4xbf16>, vector<4x256xbf16>, vector<12x256xf32> -> vector<12x256xf32>
    %226 = arith.addf %217, %225 : vector<12x256xf32>
    %c255_i32_163 = arith.constant 255 : i32
    %227 = tpu.dynamic_rotate %186 by %c255_i32_163 dim 1 : vector<4x256xf32>, i32 -> vector<4x256xf32>
    %c4_164 = arith.constant 4 : index
    %c0_165 = arith.constant 0 : index
    %228 = vector.load %arg4[%c4_164, %c0_165] : memref<8x256xf32, #tpu.memory_space<vmem>>, vector<1x256xf32>
    %229 = vector.broadcast %228 : vector<1x256xf32> to vector<4x256xf32>
    %230 = arith.mulf %227, %229 : vector<4x256xf32>
    %c5_166 = arith.constant 5 : index
    %c0_167 = arith.constant 0 : index
    %c0_168 = arith.constant 0 : index
    %231 = vector.load %arg2[%c5_166, %c0_167, %c0_168] : memref<9x12x4xbf16, #tpu.memory_space<vmem>>, vector<1x12x4xbf16>
    %232 = vector.shape_cast %231 : vector<1x12x4xbf16> to vector<12x4xbf16>
    %233 = arith.truncf %230 : vector<4x256xf32> to vector<4x256xbf16>
    %cst_169 = arith.constant dense<0.000000e+00> : vector<12x256xf32>
    %234 = tpu.matmul %232, %233, %cst_169 {dimension_numbers = #tpu.dot_dimension_numbers<[1], [0], [0], [1], [0, 0, 1, 1], [], []>} : vector<12x4xbf16>, vector<4x256xbf16>, vector<12x256xf32> -> vector<12x256xf32>
    %235 = arith.addf %226, %234 : vector<12x256xf32>
    %c241_i32_170 = arith.constant 241 : i32
    %236 = tpu.dynamic_rotate %186 by %c241_i32_170 dim 1 : vector<4x256xf32>, i32 -> vector<4x256xf32>
    %c5_171 = arith.constant 5 : index
    %c0_172 = arith.constant 0 : index
    %237 = vector.load %arg4[%c5_171, %c0_172] : memref<8x256xf32, #tpu.memory_space<vmem>>, vector<1x256xf32>
    %238 = vector.broadcast %237 : vector<1x256xf32> to vector<4x256xf32>
    %239 = arith.mulf %236, %238 : vector<4x256xf32>
    %c6_173 = arith.constant 6 : index
    %c0_174 = arith.constant 0 : index
    %c0_175 = arith.constant 0 : index
    %240 = vector.load %arg2[%c6_173, %c0_174, %c0_175] : memref<9x12x4xbf16, #tpu.memory_space<vmem>>, vector<1x12x4xbf16>
    %241 = vector.shape_cast %240 : vector<1x12x4xbf16> to vector<12x4xbf16>
    %242 = arith.truncf %239 : vector<4x256xf32> to vector<4x256xbf16>
    %cst_176 = arith.constant dense<0.000000e+00> : vector<12x256xf32>
    %243 = tpu.matmul %241, %242, %cst_176 {dimension_numbers = #tpu.dot_dimension_numbers<[1], [0], [0], [1], [0, 0, 1, 1], [], []>} : vector<12x4xbf16>, vector<4x256xbf16>, vector<12x256xf32> -> vector<12x256xf32>
    %244 = arith.addf %235, %243 : vector<12x256xf32>
    %c240_i32_177 = arith.constant 240 : i32
    %245 = tpu.dynamic_rotate %186 by %c240_i32_177 dim 1 : vector<4x256xf32>, i32 -> vector<4x256xf32>
    %c6_178 = arith.constant 6 : index
    %c0_179 = arith.constant 0 : index
    %246 = vector.load %arg4[%c6_178, %c0_179] : memref<8x256xf32, #tpu.memory_space<vmem>>, vector<1x256xf32>
    %247 = vector.broadcast %246 : vector<1x256xf32> to vector<4x256xf32>
    %248 = arith.mulf %245, %247 : vector<4x256xf32>
    %c7_180 = arith.constant 7 : index
    %c0_181 = arith.constant 0 : index
    %c0_182 = arith.constant 0 : index
    %249 = vector.load %arg2[%c7_180, %c0_181, %c0_182] : memref<9x12x4xbf16, #tpu.memory_space<vmem>>, vector<1x12x4xbf16>
    %250 = vector.shape_cast %249 : vector<1x12x4xbf16> to vector<12x4xbf16>
    %251 = arith.truncf %248 : vector<4x256xf32> to vector<4x256xbf16>
    %cst_183 = arith.constant dense<0.000000e+00> : vector<12x256xf32>
    %252 = tpu.matmul %250, %251, %cst_183 {dimension_numbers = #tpu.dot_dimension_numbers<[1], [0], [0], [1], [0, 0, 1, 1], [], []>} : vector<12x4xbf16>, vector<4x256xbf16>, vector<12x256xf32> -> vector<12x256xf32>
    %253 = arith.addf %244, %252 : vector<12x256xf32>
    %c239_i32_184 = arith.constant 239 : i32
    %254 = tpu.dynamic_rotate %186 by %c239_i32_184 dim 1 : vector<4x256xf32>, i32 -> vector<4x256xf32>
    %c7_185 = arith.constant 7 : index
    %c0_186 = arith.constant 0 : index
    %255 = vector.load %arg4[%c7_185, %c0_186] : memref<8x256xf32, #tpu.memory_space<vmem>>, vector<1x256xf32>
    %256 = vector.broadcast %255 : vector<1x256xf32> to vector<4x256xf32>
    %257 = arith.mulf %254, %256 : vector<4x256xf32>
    %c8_187 = arith.constant 8 : index
    %c0_188 = arith.constant 0 : index
    %c0_189 = arith.constant 0 : index
    %258 = vector.load %arg2[%c8_187, %c0_188, %c0_189] : memref<9x12x4xbf16, #tpu.memory_space<vmem>>, vector<1x12x4xbf16>
    %259 = vector.shape_cast %258 : vector<1x12x4xbf16> to vector<12x4xbf16>
    %260 = arith.truncf %257 : vector<4x256xf32> to vector<4x256xbf16>
    %cst_190 = arith.constant dense<0.000000e+00> : vector<12x256xf32>
    %261 = tpu.matmul %259, %260, %cst_190 {dimension_numbers = #tpu.dot_dimension_numbers<[1], [0], [0], [1], [0, 0, 1, 1], [], []>} : vector<12x4xbf16>, vector<4x256xbf16>, vector<12x256xf32> -> vector<12x256xf32>
    %262 = arith.addf %253, %261 : vector<12x256xf32>
    %263 = vector.broadcast %0 : vector<12x1xf32> to vector<12x256xf32>
    %264 = arith.addf %262, %263 : vector<12x256xf32>
    %cst_191 = arith.constant 0.000000e+00 : f32
    %265 = vector.broadcast %cst_191 : f32 to vector<12x256xf32>
    %266 = arith.maximumf %264, %265 : vector<12x256xf32>
    %267 = arith.truncf %266 : vector<12x256xf32> to vector<12x256xbf16>
    %c4_192 = arith.constant 4 : index
    %c0_193 = arith.constant 0 : index
    %c0_194 = arith.constant 0 : index
    %268 = vector.load %arg3[%c4_192, %c0_193, %c0_194] : memref<9x4x12xbf16, #tpu.memory_space<vmem>>, vector<1x4x12xbf16>
    %269 = vector.shape_cast %268 : vector<1x4x12xbf16> to vector<4x12xbf16>
    %cst_195 = arith.constant dense<0.000000e+00> : vector<4x256xf32>
    %270 = tpu.matmul %269, %267, %cst_195 {dimension_numbers = #tpu.dot_dimension_numbers<[1], [0], [0], [1], [0, 0, 1, 1], [], []>} : vector<4x12xbf16>, vector<12x256xbf16>, vector<4x256xf32> -> vector<4x256xf32>
    %c0_196 = arith.constant 0 : index
    %c0_197 = arith.constant 0 : index
    %c0_198 = arith.constant 0 : index
    %271 = vector.load %arg3[%c0_196, %c0_197, %c0_198] : memref<9x4x12xbf16, #tpu.memory_space<vmem>>, vector<1x4x12xbf16>
    %272 = vector.shape_cast %271 : vector<1x4x12xbf16> to vector<4x12xbf16>
    %cst_199 = arith.constant dense<0.000000e+00> : vector<4x256xf32>
    %273 = tpu.matmul %272, %267, %cst_199 {dimension_numbers = #tpu.dot_dimension_numbers<[1], [0], [0], [1], [0, 0, 1, 1], [], []>} : vector<4x12xbf16>, vector<12x256xbf16>, vector<4x256xf32> -> vector<4x256xf32>
    %c17_i32_200 = arith.constant 17 : i32
    %274 = tpu.dynamic_rotate %273 by %c17_i32_200 dim 1 : vector<4x256xf32>, i32 -> vector<4x256xf32>
    %c0_201 = arith.constant 0 : index
    %c0_202 = arith.constant 0 : index
    %275 = vector.load %arg4[%c0_201, %c0_202] : memref<8x256xf32, #tpu.memory_space<vmem>>, vector<1x256xf32>
    %276 = vector.broadcast %275 : vector<1x256xf32> to vector<4x256xf32>
    %277 = arith.mulf %274, %276 : vector<4x256xf32>
    %278 = arith.addf %270, %277 : vector<4x256xf32>
    %c1_203 = arith.constant 1 : index
    %c0_204 = arith.constant 0 : index
    %c0_205 = arith.constant 0 : index
    %279 = vector.load %arg3[%c1_203, %c0_204, %c0_205] : memref<9x4x12xbf16, #tpu.memory_space<vmem>>, vector<1x4x12xbf16>
    %280 = vector.shape_cast %279 : vector<1x4x12xbf16> to vector<4x12xbf16>
    %cst_206 = arith.constant dense<0.000000e+00> : vector<4x256xf32>
    %281 = tpu.matmul %280, %267, %cst_206 {dimension_numbers = #tpu.dot_dimension_numbers<[1], [0], [0], [1], [0, 0, 1, 1], [], []>} : vector<4x12xbf16>, vector<12x256xbf16>, vector<4x256xf32> -> vector<4x256xf32>
    %c16_i32_207 = arith.constant 16 : i32
    %282 = tpu.dynamic_rotate %281 by %c16_i32_207 dim 1 : vector<4x256xf32>, i32 -> vector<4x256xf32>
    %c1_208 = arith.constant 1 : index
    %c0_209 = arith.constant 0 : index
    %283 = vector.load %arg4[%c1_208, %c0_209] : memref<8x256xf32, #tpu.memory_space<vmem>>, vector<1x256xf32>
    %284 = vector.broadcast %283 : vector<1x256xf32> to vector<4x256xf32>
    %285 = arith.mulf %282, %284 : vector<4x256xf32>
    %286 = arith.addf %278, %285 : vector<4x256xf32>
    %c2_210 = arith.constant 2 : index
    %c0_211 = arith.constant 0 : index
    %c0_212 = arith.constant 0 : index
    %287 = vector.load %arg3[%c2_210, %c0_211, %c0_212] : memref<9x4x12xbf16, #tpu.memory_space<vmem>>, vector<1x4x12xbf16>
    %288 = vector.shape_cast %287 : vector<1x4x12xbf16> to vector<4x12xbf16>
    %cst_213 = arith.constant dense<0.000000e+00> : vector<4x256xf32>
    %289 = tpu.matmul %288, %267, %cst_213 {dimension_numbers = #tpu.dot_dimension_numbers<[1], [0], [0], [1], [0, 0, 1, 1], [], []>} : vector<4x12xbf16>, vector<12x256xbf16>, vector<4x256xf32> -> vector<4x256xf32>
    %c15_i32_214 = arith.constant 15 : i32
    %290 = tpu.dynamic_rotate %289 by %c15_i32_214 dim 1 : vector<4x256xf32>, i32 -> vector<4x256xf32>
    %c2_215 = arith.constant 2 : index
    %c0_216 = arith.constant 0 : index
    %291 = vector.load %arg4[%c2_215, %c0_216] : memref<8x256xf32, #tpu.memory_space<vmem>>, vector<1x256xf32>
    %292 = vector.broadcast %291 : vector<1x256xf32> to vector<4x256xf32>
    %293 = arith.mulf %290, %292 : vector<4x256xf32>
    %294 = arith.addf %286, %293 : vector<4x256xf32>
    %c3_217 = arith.constant 3 : index
    %c0_218 = arith.constant 0 : index
    %c0_219 = arith.constant 0 : index
    %295 = vector.load %arg3[%c3_217, %c0_218, %c0_219] : memref<9x4x12xbf16, #tpu.memory_space<vmem>>, vector<1x4x12xbf16>
    %296 = vector.shape_cast %295 : vector<1x4x12xbf16> to vector<4x12xbf16>
    %cst_220 = arith.constant dense<0.000000e+00> : vector<4x256xf32>
    %297 = tpu.matmul %296, %267, %cst_220 {dimension_numbers = #tpu.dot_dimension_numbers<[1], [0], [0], [1], [0, 0, 1, 1], [], []>} : vector<4x12xbf16>, vector<12x256xbf16>, vector<4x256xf32> -> vector<4x256xf32>
    %c1_i32_221 = arith.constant 1 : i32
    %298 = tpu.dynamic_rotate %297 by %c1_i32_221 dim 1 : vector<4x256xf32>, i32 -> vector<4x256xf32>
    %c3_222 = arith.constant 3 : index
    %c0_223 = arith.constant 0 : index
    %299 = vector.load %arg4[%c3_222, %c0_223] : memref<8x256xf32, #tpu.memory_space<vmem>>, vector<1x256xf32>
    %300 = vector.broadcast %299 : vector<1x256xf32> to vector<4x256xf32>
    %301 = arith.mulf %298, %300 : vector<4x256xf32>
    %302 = arith.addf %294, %301 : vector<4x256xf32>
    %c5_224 = arith.constant 5 : index
    %c0_225 = arith.constant 0 : index
    %c0_226 = arith.constant 0 : index
    %303 = vector.load %arg3[%c5_224, %c0_225, %c0_226] : memref<9x4x12xbf16, #tpu.memory_space<vmem>>, vector<1x4x12xbf16>
    %304 = vector.shape_cast %303 : vector<1x4x12xbf16> to vector<4x12xbf16>
    %cst_227 = arith.constant dense<0.000000e+00> : vector<4x256xf32>
    %305 = tpu.matmul %304, %267, %cst_227 {dimension_numbers = #tpu.dot_dimension_numbers<[1], [0], [0], [1], [0, 0, 1, 1], [], []>} : vector<4x12xbf16>, vector<12x256xbf16>, vector<4x256xf32> -> vector<4x256xf32>
    %c255_i32_228 = arith.constant 255 : i32
    %306 = tpu.dynamic_rotate %305 by %c255_i32_228 dim 1 : vector<4x256xf32>, i32 -> vector<4x256xf32>
    %c4_229 = arith.constant 4 : index
    %c0_230 = arith.constant 0 : index
    %307 = vector.load %arg4[%c4_229, %c0_230] : memref<8x256xf32, #tpu.memory_space<vmem>>, vector<1x256xf32>
    %308 = vector.broadcast %307 : vector<1x256xf32> to vector<4x256xf32>
    %309 = arith.mulf %306, %308 : vector<4x256xf32>
    %310 = arith.addf %302, %309 : vector<4x256xf32>
    %c6_231 = arith.constant 6 : index
    %c0_232 = arith.constant 0 : index
    %c0_233 = arith.constant 0 : index
    %311 = vector.load %arg3[%c6_231, %c0_232, %c0_233] : memref<9x4x12xbf16, #tpu.memory_space<vmem>>, vector<1x4x12xbf16>
    %312 = vector.shape_cast %311 : vector<1x4x12xbf16> to vector<4x12xbf16>
    %cst_234 = arith.constant dense<0.000000e+00> : vector<4x256xf32>
    %313 = tpu.matmul %312, %267, %cst_234 {dimension_numbers = #tpu.dot_dimension_numbers<[1], [0], [0], [1], [0, 0, 1, 1], [], []>} : vector<4x12xbf16>, vector<12x256xbf16>, vector<4x256xf32> -> vector<4x256xf32>
    %c241_i32_235 = arith.constant 241 : i32
    %314 = tpu.dynamic_rotate %313 by %c241_i32_235 dim 1 : vector<4x256xf32>, i32 -> vector<4x256xf32>
    %c5_236 = arith.constant 5 : index
    %c0_237 = arith.constant 0 : index
    %315 = vector.load %arg4[%c5_236, %c0_237] : memref<8x256xf32, #tpu.memory_space<vmem>>, vector<1x256xf32>
    %316 = vector.broadcast %315 : vector<1x256xf32> to vector<4x256xf32>
    %317 = arith.mulf %314, %316 : vector<4x256xf32>
    %318 = arith.addf %310, %317 : vector<4x256xf32>
    %c7_238 = arith.constant 7 : index
    %c0_239 = arith.constant 0 : index
    %c0_240 = arith.constant 0 : index
    %319 = vector.load %arg3[%c7_238, %c0_239, %c0_240] : memref<9x4x12xbf16, #tpu.memory_space<vmem>>, vector<1x4x12xbf16>
    %320 = vector.shape_cast %319 : vector<1x4x12xbf16> to vector<4x12xbf16>
    %cst_241 = arith.constant dense<0.000000e+00> : vector<4x256xf32>
    %321 = tpu.matmul %320, %267, %cst_241 {dimension_numbers = #tpu.dot_dimension_numbers<[1], [0], [0], [1], [0, 0, 1, 1], [], []>} : vector<4x12xbf16>, vector<12x256xbf16>, vector<4x256xf32> -> vector<4x256xf32>
    %c240_i32_242 = arith.constant 240 : i32
    %322 = tpu.dynamic_rotate %321 by %c240_i32_242 dim 1 : vector<4x256xf32>, i32 -> vector<4x256xf32>
    %c6_243 = arith.constant 6 : index
    %c0_244 = arith.constant 0 : index
    %323 = vector.load %arg4[%c6_243, %c0_244] : memref<8x256xf32, #tpu.memory_space<vmem>>, vector<1x256xf32>
    %324 = vector.broadcast %323 : vector<1x256xf32> to vector<4x256xf32>
    %325 = arith.mulf %322, %324 : vector<4x256xf32>
    %326 = arith.addf %318, %325 : vector<4x256xf32>
    %c8_245 = arith.constant 8 : index
    %c0_246 = arith.constant 0 : index
    %c0_247 = arith.constant 0 : index
    %327 = vector.load %arg3[%c8_245, %c0_246, %c0_247] : memref<9x4x12xbf16, #tpu.memory_space<vmem>>, vector<1x4x12xbf16>
    %328 = vector.shape_cast %327 : vector<1x4x12xbf16> to vector<4x12xbf16>
    %cst_248 = arith.constant dense<0.000000e+00> : vector<4x256xf32>
    %329 = tpu.matmul %328, %267, %cst_248 {dimension_numbers = #tpu.dot_dimension_numbers<[1], [0], [0], [1], [0, 0, 1, 1], [], []>} : vector<4x12xbf16>, vector<12x256xbf16>, vector<4x256xf32> -> vector<4x256xf32>
    %c239_i32_249 = arith.constant 239 : i32
    %330 = tpu.dynamic_rotate %329 by %c239_i32_249 dim 1 : vector<4x256xf32>, i32 -> vector<4x256xf32>
    %c7_250 = arith.constant 7 : index
    %c0_251 = arith.constant 0 : index
    %331 = vector.load %arg4[%c7_250, %c0_251] : memref<8x256xf32, #tpu.memory_space<vmem>>, vector<1x256xf32>
    %332 = vector.broadcast %331 : vector<1x256xf32> to vector<4x256xf32>
    %333 = arith.mulf %330, %332 : vector<4x256xf32>
    %334 = arith.addf %326, %333 : vector<4x256xf32>
    %335 = vector.broadcast %1 : vector<4x1xf32> to vector<4x256xf32>
    %336 = arith.addf %334, %335 : vector<4x256xf32>
    %cst_252 = arith.constant dense<0.000000e+00> : vector<4xf32>
    %337 = vector.multi_reduction <add>, %336, %cst_252 [1] : vector<4x256xf32> to vector<4xf32>
    %338 = vector.shape_cast %337 : vector<4xf32> to vector<4x1xf32>
    %cst_253 = arith.constant 3.906250e-03 : f32
    %339 = vector.broadcast %cst_253 : f32 to vector<4x1xf32>
    %340 = arith.mulf %338, %339 : vector<4x1xf32>
    %341 = vector.broadcast %340 : vector<4x1xf32> to vector<4x12xf32>
    %342 = arith.mulf %3, %341 : vector<4x12xf32>
    %cst_254 = arith.constant dense<0.000000e+00> : vector<12xf32>
    %343 = vector.multi_reduction <add>, %342, %cst_254 [0] : vector<4x12xf32> to vector<12xf32>
    %344 = vector.shape_cast %343 : vector<12xf32> to vector<1x12xf32>
    %345 = arith.addf %344, %5 : vector<1x12xf32>
    %cst_255 = arith.constant 0.000000e+00 : f32
    %346 = vector.broadcast %cst_255 : f32 to vector<1x12xf32>
    %347 = arith.maximumf %345, %346 : vector<1x12xf32>
    %348 = vector.broadcast %347 : vector<1x12xf32> to vector<4x12xf32>
    %349 = arith.mulf %4, %348 : vector<4x12xf32>
    %cst_256 = arith.constant dense<0.000000e+00> : vector<4xf32>
    %350 = vector.multi_reduction <add>, %349, %cst_256 [1] : vector<4x12xf32> to vector<4xf32>
    %351 = vector.shape_cast %350 : vector<4xf32> to vector<4x1xf32>
    %352 = arith.addf %351, %2 : vector<4x1xf32>
    %353 = arith.negf %352 : vector<4x1xf32>
    %354 = math.exp %353 : vector<4x1xf32>
    %cst_257 = arith.constant 1.000000e+00 : f32
    %355 = vector.broadcast %cst_257 : f32 to vector<4x1xf32>
    %356 = arith.addf %355, %354 : vector<4x1xf32>
    %357 = arith.divf %355, %356 : vector<4x1xf32>
    %358 = vector.broadcast %357 : vector<4x1xf32> to vector<4x256xf32>
    %359 = arith.mulf %336, %358 : vector<4x256xf32>
    %360 = arith.addf %359, %186 : vector<4x256xf32>
    %c0_258 = arith.constant 0 : index
    %c1_259 = arith.constant 1 : index
    %c0_260 = arith.constant 0 : index
    %c0_261 = arith.constant 0 : index
    %361 = vector.load %arg6[%c0_258, %c1_259, %c0_260, %c0_261] : memref<1x2x4x256xf32, #tpu.memory_space<vmem>>, vector<1x1x4x256xf32>
    %362 = vector.shape_cast %361 : vector<1x1x4x256xf32> to vector<4x256xf32>
    %363 = vector.shape_cast %360 : vector<4x256xf32> to vector<1x1x4x256xf32>
    tpu.vector_store %arg6[%c0_258, %c1_259, %c0_260, %c0_261], %363 {strides = array<i32>} : memref<1x2x4x256xf32, #tpu.memory_space<vmem>>, vector<1x1x4x256xf32>,
    return
  }
  func.func @transform_0(%arg0: i32) -> (i32, i32, i32, i32) {
    %c0_i32 = arith.constant 0 : i32
    %c0_i32_0 = arith.constant 0 : i32
    %c0_i32_1 = arith.constant 0 : i32
    %c0_i32_2 = arith.constant 0 : i32
    return %arg0, %c0_i32, %c0_i32_0, %c0_i32_1 : i32, i32, i32, i32
  }
  func.func @transform_1(%arg0: i32) -> (i32, i32, i32) {
    %c0_i32 = arith.constant 0 : i32
    %c0_i32_0 = arith.constant 0 : i32
    %c0_i32_1 = arith.constant 0 : i32
    %c0_i32_2 = arith.constant 0 : i32
    return %c0_i32, %c0_i32_0, %c0_i32_1 : i32, i32, i32
  }
  func.func @transform_2(%arg0: i32) -> (i32, i32, i32) {
    %c0_i32 = arith.constant 0 : i32
    %c0_i32_0 = arith.constant 0 : i32
    %c0_i32_1 = arith.constant 0 : i32
    %c0_i32_2 = arith.constant 0 : i32
    return %c0_i32, %c0_i32_0, %c0_i32_1 : i32, i32, i32
  }
  func.func @transform_3(%arg0: i32) -> (i32, i32) {
    %c0_i32 = arith.constant 0 : i32
    %c0_i32_0 = arith.constant 0 : i32
    %c0_i32_1 = arith.constant 0 : i32
    return %c0_i32, %c0_i32_0 : i32, i32
  }
  func.func @transform_4(%arg0: i32) -> (i32, i32) {
    %c0_i32 = arith.constant 0 : i32
    %c0_i32_0 = arith.constant 0 : i32
    %c0_i32_1 = arith.constant 0 : i32
    return %c0_i32, %c0_i32_0 : i32, i32
  }
  func.func @transform_5(%arg0: i32) -> (i32, i32, i32, i32) {
    %c0_i32 = arith.constant 0 : i32
    %c0_i32_0 = arith.constant 0 : i32
    %c0_i32_1 = arith.constant 0 : i32
    %c0_i32_2 = arith.constant 0 : i32
    return %arg0, %c0_i32, %c0_i32_0, %c0_i32_1 : i32, i32, i32, i32
  }
}

</mosaic_0001>

<bundles_post_ra>
// kernel: rcab_bn_4.1
= control target key start
LH: loop header
LB: loop body
LE: loop exit
PB: predicated region body
PF: predicated region fallthrough
CT: control target
= control target key end

     0   :  { %v2943_v1 = vmov 0   ;;  %s2944_s20 = smov 17   ;;  %s2945_s21 = smov 16   ;;  %v38_v5 = vlaneseq  ;;  %vm70_vm2 = vcmask 1041408   ;;  %vm66_vm3 = vcmask 31744   ;;  %s3786_s0 = inlined_call_operand.vmem [shape: f32[1,2,4,256], index: 0, kind: input, shape index: {}]   ;;  %s3787_s1 = inlined_call_operand.vmem [shape: bf16[9,12,4], index: 1, kind: input, shape index: {}]   ;;  %s3788_s3 = inlined_call_operand.vmem [shape: f32[8,256], index: 3, kind: input, shape index: {}]   ;;  %s3789_s4 = inlined_call_operand.vmem [shape: f32[16,128], index: 4, kind: input, shape index: {}]   ;;  %s3790_s2 = inlined_call_operand.vmem [shape: bf16[9,4,12], index: 2, kind: input, shape index: {}]   ;;  %s3791_s5 = inlined_call_operand.vmem [shape: f32[1,2,4,256], index: 5, kind: output, shape index: {}]  }
   0x1   :  { %v2988_v0 = vld [vmem:[%s3786_s0] sm:$0xff]  ;;  %109 = vmatprep.mubr.bf16.mxu0 %v2943_v1  ;;  %2908 = vset.pattern.permute.xlu0 %v2943_v1  ;;  %s2946_s22 = smov 15   ;;  %s2947_s23 = smov 1   ;;  %v3029_v3 = vld [vmem:[%s3786_s0 + $0x8] sm:$0xff]  ;;  %vm820_vm10 = vcmask 1045504   ;;  %vm816_vm11 = vcmask 97280  }
   0x2   :  { %34 = vrot.lane.b32.xlu0 %v2988_v0, %s2944_s20  ;;  %v2996_v2 = vcombine.high %v2988_v0, %v2988_v0  ;;  %177 = vrot.lane.b32.xlu1 %v2988_v0, %s2945_s21  ;;  %s2948_s24 = smov 127   ;;  %s2949_s25 = smov 113   ;;  %v3037_v4 = vcombine.high %v3029_v3, %v3029_v3  ;;  %v46_v6 = vshrl.u32 %v38_v5, 7  ;;  %v3071_v7 = vand.u32 127, %v38_v5  ;;  %v2915_v30 = vld [vmem:[%s3787_s1] sm:$0x3f]  }
   0x3   :  { %2909 = vset.pattern.permute.xlu1 %v2943_v1  ;;  %859 = vmatprep.mubr.bf16.mxu1 %v2943_v1  ;;  %s2950_s26 = smov 112   ;;  %s2951_s29 = smov 111   ;;  %v43_v10 = vld [vmem:[%s3788_s3] ss:$8 sm:$0x3]  ;;  %v29_v24 = vpack.c.bf16 %v2988_v0, %v2988_v0  ;;  %vm1319_vm12 = vcmask 1043456  }
   0x4   :  { %v3073_v8 = vsub.s32 0, %v46_v6  ;;  %v3075_v9 = vsub.s32 1, %v46_v6  ;;  %v2684_v13 = vld [vmem:[%s3788_s3 + $0x1] ss:$8 sm:$0x3]  ;;  %vm40_vm0 = vcmp.lt.s32.totalorder %v3071_v7, 17  ;;  %v30_v27 = vpack.c.bf16 %v2996_v2, %v2996_v2 }
   0x5   :  { %vm181_vm1 = vcmp.lt.s32.totalorder %v3071_v7, 16  ;;  %v129_v31 = vsel %vm70_vm2, %v29_v24, 0  ;;  %v2690_v35 = vld [vmem:[%s3788_s3 + $0x2] ss:$8 sm:$0x3]  ;;  %vm269_vm4 = vcmp.lt.s32.totalorder %v3071_v7, 15 }
   0x6   :  { %36 = vrot.lane.b32.xlu0 %v2996_v2, %s2944_s20  ;;  %179 = vrot.lane.b32.xlu1 %v2996_v2, %s2945_s21  ;;  %v3085_v14 = vrot.slane %v43_v10, %v3073_v8  ;;  %v3088_v15 = vrot.slane %v43_v10, %v3075_v9  ;;  %v3092_v17 = vrot.slane %v2684_v13, %v3075_v9  ;;  %v2916_v43 = vld [vmem:[%s3787_s1 + $0x20] sm:$0x3f]   ;;  %vm357_vm5 = vcmp.lt.s32.totalorder %v3071_v7, 1  ;;  %v2917_v56 = vld [vmem:[%s3787_s1 + $0x8] sm:$0x3f]  }
   0x7   :  { %v3115_v32 = vrot.slane %v2684_v13, %v3073_v8  ;;  %v3128_v39 = vrot.slane %v2690_v35, %v3075_v9  ;;  %v3138_v45 = vrot.slane %v2690_v35, %v3073_v8  ;;  %v2696_v48 = vld [vmem:[%s3788_s3 + $0x3] ss:$8 sm:$0x3]  ;;  %v2702_v61 = vld [vmem:[%s3788_s3 + $0x4] ss:$8 sm:$0x3] }
   0x8   :  { %v3151_v52 = vrot.slane %v2696_v48, %v3075_v9  ;;  %v3161_v58 = vrot.slane %v2696_v48, %v3073_v8  ;;  %vm445_vm6 = vcmp.lt.s32.totalorder %v3071_v7, 127  ;;  %v3174_v5 = vrot.slane %v2702_v61, %v3075_v9 }
   0x9   :  { %vm533_vm7 = vcmp.lt.s32.totalorder %v3071_v7, 113  ;;  %vm621_vm8 = vcmp.lt.s32.totalorder %v3071_v7, 112  ;;  %vm709_vm9 = vcmp.lt.s32.totalorder %v3071_v7, 111  ;;  %vm1327_vm13 = vcmask 224384  }
   0xa   :  { %267 = vrot.lane.b32.xlu1 %v2996_v2, %s2946_s22  ;;  %265 = vrot.lane.b32.xlu0 %v2988_v0, %s2946_s22  ;;  %vm1350_vm14 = vcmask 93184  }
   0xe   :  { %355 = vrot.lane.b32.xlu1 %v2996_v2, %s2947_s23  ;;  %353 = vrot.lane.b32.xlu0 %v2988_v0, %s2947_s23 }
  0x12   :  { %443 = vrot.lane.b32.xlu1 %v2996_v2, %s2948_s24  ;;  %441 = vrot.lane.b32.xlu0 %v2988_v0, %s2948_s24 }
  0x16   :  { %531 = vrot.lane.b32.xlu1 %v2996_v2, %s2949_s25  ;;  %529 = vrot.lane.b32.xlu0 %v2988_v0, %s2949_s25 }
  0x1a   :  { %619 = vrot.lane.b32.xlu1 %v2996_v2, %s2950_s26  ;;  %617 = vrot.lane.b32.xlu0 %v2988_v0, %s2950_s26 }
  0x1e   :  { %707 = vrot.lane.b32.xlu1 %v2996_v2, %s2951_s29  ;;  %705 = vrot.lane.b32.xlu0 %v2988_v0, %s2951_s29 }
  0x22   :  { %1386 = vrot.lane.b32.xlu1 %v3037_v4, %s2944_s20  ;;  %1384 = vrot.lane.b32.xlu0 %v3029_v3, %s2944_s20 }
  0x26   :  { %1524 = vrot.lane.b32.xlu1 %v3037_v4, %s2945_s21  ;;  %1522 = vrot.lane.b32.xlu0 %v3029_v3, %s2945_s21 }
  0x2a   :  { %1609 = vrot.lane.b32.xlu1 %v3037_v4, %s2946_s22  ;;  %1607 = vrot.lane.b32.xlu0 %v3029_v3, %s2946_s22 }
  0x2e   :  { %1694 = vrot.lane.b32.xlu1 %v3037_v4, %s2947_s23  ;;  %1692 = vrot.lane.b32.xlu0 %v3029_v3, %s2947_s23 }
  0x32   :  { %1779 = vrot.lane.b32.xlu1 %v3037_v4, %s2948_s24  ;;  %1777 = vrot.lane.b32.xlu0 %v3029_v3, %s2948_s24 }
  0x36   :  { %1864 = vrot.lane.b32.xlu1 %v3037_v4, %s2949_s25  ;;  %1862 = vrot.lane.b32.xlu0 %v3029_v3, %s2949_s25 }
  0x3a   :  { %1949 = vrot.lane.b32.xlu1 %v3037_v4, %s2950_s26  ;;  %1947 = vrot.lane.b32.xlu0 %v3029_v3, %s2950_s26 }
  0x3e   :  { %2034 = vrot.lane.b32.xlu1 %v3037_v4, %s2951_s29  ;;  %2032 = vrot.lane.b32.xlu0 %v3029_v3, %s2951_s29 }
  0x74   :  { %v35_v11 = vpop.permute.xlu0 %34  ;;  %v178_v12 = vpop.permute.xlu1 %177 }
  0x78   :  { %v37_v16 = vpop.permute.xlu0 %36  ;;  %v180_v18 = vpop.permute.xlu1 %179 }
  0x79   :  { %v41_v19 = vsel %vm40_vm0, %v35_v11, %v37_v16  ;;  %v42_v20 = vsel %vm40_vm0, %v37_v16, %v35_v11  ;;  %v182_v21 = vsel %vm181_vm1, %v178_v12, %v180_v18  ;;  %v183_v34 = vsel %vm181_vm1, %v180_v18, %v178_v12  ;;  %v2918_v12 = vld [vmem:[%s3787_s1 + $0x10] sm:$0x3f]  }
  0x7a   :  { %v55_v22 = vmul.f32 %v3085_v14, %v42_v20  ;;  %v56_v23 = vmul.f32 %v3088_v15, %v41_v19  ;;  %v198_v28 = vmul.f32 %v3092_v17, %v182_v21  ;;  %v197_v38 = vmul.f32 %v3115_v32, %v183_v34  ;;  %v2708_v20 = vld [vmem:[%s3788_s3 + $0x5] ss:$8 sm:$0x3]  ;;  %v2714_v34 = vld [vmem:[%s3788_s3 + $0x6] ss:$8 sm:$0x3] }
  0x7b   :  { %v3184_v16 = vrot.slane %v2702_v61, %v3073_v8  ;;  %v3197_v24 = vrot.slane %v2708_v20, %v3075_v9  ;;  %v3236_v48 = vrot.slane %v2714_v34, %v3073_v8  ;;  %v2921_v61 = vld [vmem:[%s3787_s1 + $0x30] sm:$0x3f]  }
  0x7c   :  { %v60_v25 = vpack.c.bf16 %v56_v23, %v56_v23  ;;  %v59_v26 = vpack.c.bf16 %v55_v22, %v55_v22  ;;  %v203_v33 = vpack.c.bf16 %v198_v28, %v198_v28  ;;  %v268_v36 = vpop.permute.xlu1 %267  ;;  %v266_v37 = vpop.permute.xlu0 %265  ;;  %v202_v41 = vpack.c.bf16 %v197_v38, %v197_v38  ;;  %v2919_v28 = vld [vmem:[%s3787_s1 + $0x18] sm:$0x3f]   ;;  %v22_v38 = vld [vmem:[%s3789_s4 + $0x8] sm:$0xf] }
  0x7d   :  { %v270_v40 = vsel %vm269_vm4, %v266_v37, %v268_v36  ;;  %v271_v47 = vsel %vm269_vm4, %v268_v36, %v266_v37  ;;  %v21_v37 = vld [vmem:[%s3789_s4] sm:$0xff]  ;;  %800 = vperm.xlu1 %2909, %v22_v38  }
  0x7e   :  { %2679 = vmatprep.subr.msk.bf16.mxu0 %vm70_vm2, %v60_v25  ;;  %v72_v29 = vsel %vm70_vm2, %v59_v26, 0  ;;  %v286_v42 = vmul.f32 %v3128_v39, %v270_v40  ;;  %v213_v44 = vsel %vm70_vm2, %v202_v41, 0  ;;  %v285_v51 = vmul.f32 %v3138_v45, %v271_v47  ;;  %795 = vperm.xlu0 %2908, %v21_v37  }
  0x7f   :  { %78 = vmatpush1.bf16.msra.mxu0 %v72_v29  ;;  %v3226_v41 = vrot.slane %v2714_v34, %v3075_v9  ;;  %v1381_v37 = vpack.c.bf16 %v3037_v4, %v3037_v4 }
  0x80   :  { %2682 = vmatprep.subr.msk.bf16.mxu0 %vm70_vm2, %v30_v27  ;;  %v291_v46 = vpack.c.bf16 %v286_v42, %v286_v42  ;;  %v356_v49 = vpop.permute.xlu1 %355  ;;  %v354_v50 = vpop.permute.xlu0 %353  ;;  %v290_v54 = vpack.c.bf16 %v285_v51, %v285_v51  ;;  %v2720_v51 = vld [vmem:[%s3788_s3 + $0x7] ss:$8 sm:$0x3] }
  0x81   :  { %v358_v53 = vsel %vm357_vm5, %v354_v50, %v356_v49  ;;  %v359_v60 = vsel %vm357_vm5, %v356_v49, %v354_v50 }
  0x82   :  { %2680 = vmatmul.mubr.msk.bf16.vlgmr.msra.gmra.mrb[0].mxu0 %vm66_vm3, %v2915_v30  ;;  %v374_v55 = vmul.f32 %v3151_v52, %v358_v53  ;;  %v301_v57 = vsel %vm70_vm2, %v290_v54, 0  ;;  %v373_v0 = vmul.f32 %v3161_v58, %v359_v60  ;;  %v3207_v30 = vrot.slane %v2708_v20, %v3073_v8 }
  0x83   :  { %135 = vmatpush1.bf16.msra.mxu0 %v129_v31  ;;  %166 = vmatprep.mubr.bf16.mxu0 %v2943_v1 }
  0x84   :  { %2688 = vmatprep.subr.msk.bf16.mxu0 %vm70_vm2, %v203_v33  ;;  %v379_v59 = vpack.c.bf16 %v374_v55, %v374_v55  ;;  %v444_v62 = vpop.permute.xlu1 %443  ;;  %v442_v63 = vpop.permute.xlu0 %441  ;;  %v378_v10 = vpack.c.bf16 %v373_v0, %v373_v0 }
  0x85   :  { %v447_v6 = vsel %vm445_vm6, %v444_v62, %v442_v63  ;;  %v446_v19 = vsel %vm445_vm6, %v442_v63, %v444_v62  ;;  %v3259_v63 = vrot.slane %v2720_v51, %v3073_v8 }
  0x86   :  { %v462_v11 = vmul.f32 %v3174_v5, %v447_v6  ;;  %v389_v13 = vsel %vm70_vm2, %v378_v10, 0  ;;  %v461_v23 = vmul.f32 %v3184_v16, %v446_v19  ;;  %v1390_v10 = vld [vmem:[%s3788_s3] ss:$8 sm:$0x3] }
  0x88   :  { %v467_v18 = vpack.c.bf16 %v462_v11, %v462_v11  ;;  %v532_v21 = vpop.permute.xlu1 %531  ;;  %v530_v22 = vpop.permute.xlu0 %529  ;;  %v466_v26 = vpack.c.bf16 %v461_v23, %v461_v23 }
  0x89   :  { %v535_v25 = vsel %vm533_vm7, %v532_v21, %v530_v22  ;;  %v534_v33 = vsel %vm533_vm7, %v530_v22, %v532_v21  ;;  %v2922_v22 = vld [vmem:[%s3787_s1 + $0x38] sm:$0x3f]  }
  0x8a   :  { %v550_v27 = vmul.f32 %v3197_v24, %v535_v25  ;;  %v477_v29 = vsel %vm70_vm2, %v466_v26, 0  ;;  %v549_v40 = vmul.f32 %v3207_v30, %v534_v33  ;;  %v3281_v25 = vrot.slane %v1390_v10, %v3073_v8  ;;  %v2923_v33 = vld [vmem:[%s3787_s1 + $0x40] sm:$0x3f]  }
  0x8c   :  { %v555_v31 = vpack.c.bf16 %v550_v27, %v550_v27  ;;  %v620_v35 = vpop.permute.xlu1 %619  ;;  %v618_v36 = vpop.permute.xlu0 %617 }
  0x8d   :  { %v623_v42 = vsel %vm621_vm8, %v620_v35, %v618_v36  ;;  %v622_v50 = vsel %vm621_vm8, %v618_v36, %v620_v35 }
  0x8e   :  { %2683 = vmatmul.mubr.msk.bf16.vlgmr.msra.gmra.mrb[0].mxu0 %vm66_vm3, %v2916_v43  ;;  %v554_v43 = vpack.c.bf16 %v549_v40, %v549_v40  ;;  %v637_v55 = vmul.f32 %v3236_v48, %v622_v50 }
  0x8f   :  { %219 = vmatpush1.bf16.msra.mxu0 %v213_v44  ;;  %250 = vmatprep.mubr.bf16.mxu0 %v2943_v1  ;;  %v638_v44 = vmul.f32 %v3226_v41, %v623_v42  ;;  %v1380_v42 = vpack.c.bf16 %v3029_v3, %v3029_v3 }
  0x90   :  { %2694 = vmatprep.subr.msk.bf16.mxu0 %vm70_vm2, %v291_v46  ;;  %v2920_v46 = vld [vmem:[%s3787_s1 + $0x28] sm:$0x3f]   ;;  %v565_v47 = vsel %vm70_vm2, %v554_v43, 0  ;;  %v708_v53 = vpop.permute.xlu1 %707  ;;  %v706_v54 = vpop.permute.xlu0 %705 }
  0x91   :  { %v643_v49 = vpack.c.bf16 %v638_v44, %v638_v44  ;;  %v710_v6 = vsel %vm709_vm9, %v706_v54, %v708_v53  ;;  %v2924_v44 = vld [vmem:[%s3787_s1] sm:$0x3f]  }
  0x94   :  { %v1387_v11 = vpop.permute.xlu1 %1386 }
  0x98   :  { %v1525_v34 = vpop.permute.xlu1 %1524 }
  0x9a   :  { %2689 = vmatmul.mubr.msk.bf16.vlgmr.msra.gmra.mrb[0].mxu0 %vm66_vm3, %v2917_v56  ;;  %v3249_v56 = vrot.slane %v2720_v51, %v3075_v9  ;;  %v2768_v51 = vld [vmem:[%s3788_s3 + $0x2] ss:$8 sm:$0x3] }
  0x9b   :  { %307 = vmatpush1.bf16.msra.mxu0 %v301_v57  ;;  %338 = vmatprep.mubr.bf16.mxu0 %v2943_v1  ;;  %v711_v57 = vsel %vm709_vm9, %v708_v53, %v706_v54 }
  0x9c   :  { %2700 = vmatprep.subr.msk.bf16.mxu0 %vm70_vm2, %v379_v59  ;;  %v642_v59 = vpack.c.bf16 %v637_v55, %v637_v55  ;;  %v726_v60 = vmul.f32 %v3249_v56, %v711_v57  ;;  %v1610_v3 = vpop.permute.xlu1 %1609  ;;  %v3326_v55 = vrot.slane %v2768_v51, %v3075_v9 }
  0x9e   :  { %v653_v62 = vsel %vm70_vm2, %v642_v59, 0  ;;  %v731_v0 = vpack.c.bf16 %v726_v60, %v726_v60 }
  0xa6   :  { %2695 = vmatmul.mubr.msk.bf16.vlgmr.msra.gmra.mrb[0].mxu0 %vm66_vm3, %v2918_v12  ;;  %v1385_v12 = vpop.permute.xlu0 %1384 }
  0xa7   :  { %395 = vmatpush1.bf16.msra.mxu0 %v389_v13  ;;  %426 = vmatprep.mubr.bf16.mxu0 %v2943_v1  ;;  %v725_v13 = vmul.f32 %v3259_v63, %v710_v6  ;;  %v1388_v19 = vsel %vm40_vm0, %v1385_v12, %v1387_v11  ;;  %v1389_v27 = vsel %vm40_vm0, %v1387_v11, %v1385_v12  ;;  %v2774_v11 = vld [vmem:[%s3788_s3 + $0x3] ss:$8 sm:$0x3]  ;;  %v1695_v12 = vpop.permute.xlu1 %1694 }
  0xa8   :  { %2706 = vmatprep.subr.msk.bf16.mxu0 %vm70_vm2, %v467_v18  ;;  %v3271_v18 = vrot.slane %v1390_v10, %v3075_v9 }
  0xa9   :  { %v730_v20 = vpack.c.bf16 %v725_v13, %v725_v13 }
  0xaa   :  { %v1403_v21 = vmul.f32 %v3271_v18, %v1388_v19  ;;  %v1523_v35 = vpop.permute.xlu0 %1522 }
  0xab   :  { %v741_v23 = vsel %vm70_vm2, %v730_v20, 0  ;;  %v1526_v40 = vsel %vm181_vm1, %v1523_v35, %v1525_v34  ;;  %v1527_v50 = vsel %vm181_vm1, %v1525_v34, %v1523_v35  ;;  %v3348_v20 = vrot.slane %v2774_v11, %v3075_v9  ;;  %v1780_v34 = vpop.permute.xlu1 %1779 }
  0xac   :  { %v1407_v26 = vpack.c.bf16 %v1403_v21, %v1403_v21 }
  0xae   :  { %v1608_v53 = vpop.permute.xlu0 %1607 }
  0xaf   :  { %v1611_v57 = vsel %vm269_vm4, %v1608_v53, %v1610_v3  ;;  %v1612_v10 = vsel %vm269_vm4, %v1610_v3, %v1608_v53  ;;  %v2786_v3 = vld [vmem:[%s3788_s3 + $0x5] ss:$8 sm:$0x3]  ;;  %v1865_v53 = vpop.permute.xlu1 %1864 }
  0xb0   :  { %v1626_v60 = vmul.f32 %v3326_v55, %v1611_v57 }
  0xb2   :  { %2701 = vmatmul.mubr.msk.bf16.vlgmr.msra.gmra.mrb[0].mxu0 %vm66_vm3, %v2919_v28  ;;  %v1402_v28 = vmul.f32 %v3281_v25, %v1389_v27  ;;  %v1630_v6 = vpack.c.bf16 %v1626_v60, %v1626_v60  ;;  %v1693_v13 = vpop.permute.xlu0 %1692 }
  0xb3   :  { %483 = vmatpush1.bf16.msra.mxu0 %v477_v29  ;;  %514 = vmatprep.mubr.bf16.mxu0 %v2943_v1  ;;  %v1696_v21 = vsel %vm357_vm5, %v1693_v13, %v1695_v12 }
  0xb4   :  { %2712 = vmatprep.subr.msk.bf16.mxu0 %vm70_vm2, %v555_v31  ;;  %v1406_v29 = vpack.c.bf16 %v1402_v28, %v1402_v28  ;;  %v2762_v31 = vld [vmem:[%s3788_s3 + $0x1] ss:$8 sm:$0x3]  ;;  %v3358_v28 = vrot.slane %v2774_v11, %v3073_v8  ;;  %v3402_v11 = vrot.slane %v2786_v3, %v3073_v8 }
  0xb5   :  { %v3299_v38 = vrot.slane %v2762_v31, %v3075_v9 }
  0xb6   :  { %v1417_v36 = vsel %vm70_vm2, %v1406_v29, 0  ;;  %v1778_v35 = vpop.permute.xlu0 %1777 }
  0xb7   :  { %v1541_v43 = vmul.f32 %v3299_v38, %v1526_v40  ;;  %v1782_v40 = vsel %vm445_vm6, %v1780_v34, %v1778_v35 }
  0xbe   :  { %2707 = vmatmul.mubr.msk.bf16.vlgmr.msra.gmra.mrb[0].mxu0 %vm66_vm3, %v2920_v46  ;;  %v1474_v46 = vsel %vm70_vm2, %v1380_v42, 0 }
  0xbf   :  { %571 = vmatpush1.bf16.msra.mxu0 %v565_v47  ;;  %602 = vmatprep.mubr.bf16.mxu0 %v2943_v1  ;;  %v3314_v47 = vrot.slane %v2762_v31, %v3073_v8  ;;  %v1697_v31 = vsel %vm357_vm5, %v1695_v12, %v1693_v13 }
  0xc0   :  { %2718 = vmatprep.subr.msk.bf16.mxu0 %vm70_vm2, %v643_v49  ;;  %v1545_v49 = vpack.c.bf16 %v1541_v43, %v1541_v43 }
  0xc1   :  { %v1540_v54 = vmul.f32 %v3314_v47, %v1527_v50 }
  0xc3   :  { %v1544_v59 = vpack.c.bf16 %v1540_v54, %v1540_v54  ;;  %v1863_v54 = vpop.permute.xlu0 %1862 }
  0xc4   :  { %v1867_v60 = vsel %vm533_vm7, %v1865_v53, %v1863_v54  ;;  %v1866_v13 = vsel %vm533_vm7, %v1863_v54, %v1865_v53  ;;  %v2930_v54 = vld [vmem:[%s3787_s1 + $0x30] sm:$0x3f]  }
  0xca   :  { %2713 = vmatmul.mubr.msk.bf16.vlgmr.msra.gmra.mrb[0].mxu0 %vm66_vm3, %v2921_v61  ;;  %v2925_v61 = vld [vmem:[%s3787_s1 + $0x20] sm:$0x3f]  }
  0xcb   :  { %659 = vmatpush1.bf16.msra.mxu0 %v653_v62  ;;  %690 = vmatprep.mubr.bf16.mxu0 %v2943_v1  ;;  %v1555_v62 = vsel %vm70_vm2, %v1544_v59, 0  ;;  %v3392_v59 = vrot.slane %v2786_v3, %v3075_v9 }
  0xcc   :  { %2724 = vmatprep.subr.msk.bf16.mxu0 %vm70_vm2, %v731_v0  ;;  %v3336_v0 = vrot.slane %v2768_v51, %v3073_v8  ;;  %v1781_v51 = vsel %vm445_vm6, %v1778_v35, %v1780_v34 }
  0xce   :  { %v1625_v19 = vmul.f32 %v3336_v0, %v1612_v10 }
  0xd6   :  { %2719 = vmatmul.mubr.msk.bf16.vlgmr.msra.gmra.mrb[0].mxu0 %vm66_vm3, %v2922_v22  ;;  %v1629_v22 = vpack.c.bf16 %v1625_v19, %v1625_v19  ;;  %v2792_v19 = vld [vmem:[%s3788_s3 + $0x6] ss:$8 sm:$0x3] }
  0xd7   :  { %747 = vmatpush1.bf16.msra.mxu0 %v741_v23  ;;  %778 = vmatprep.mubr.bf16.mxu0 %v2943_v1  ;;  %v1711_v23 = vmul.f32 %v3348_v20, %v1696_v21  ;;  %v1950_v21 = vpop.permute.xlu1 %1949  ;;  %v3424_v35 = vrot.slane %v2792_v19, %v3073_v8 }
  0xd8   :  { %2757 = vmatprep.subr.msk.bf16.mxu0 %vm70_vm2, %v1407_v26  ;;  %v2926_v26 = vld [vmem:[%s3787_s1 + $0x8] sm:$0x3f]   ;;  %v1640_v27 = vsel %vm70_vm2, %v1629_v22, 0  ;;  %v1948_v22 = vpop.permute.xlu0 %1947 }
  0xd9   :  { %v1715_v29 = vpack.c.bf16 %v1711_v23, %v1711_v23  ;;  %v1880_v23 = vmul.f32 %v3402_v11, %v1866_v13  ;;  %v2932_v13 = vld [vmem:[%s3787_s1 + $0x40] sm:$0x3f]  }
  0xe2   :  { %2725 = vmatmul.mubr.msk.bf16.vlgmr.msra.gmra.mrb[0].mxu0 %vm66_vm3, %v2923_v33  ;;  %v2780_v33 = vld [vmem:[%s3788_s3 + $0x4] ss:$8 sm:$0x3] }
  0xe3   :  { %1423 = vmatpush1.bf16.msra.mxu0 %v1417_v36  ;;  %1454 = vmatprep.mubr.bf16.mxu0 %v2943_v1  ;;  %v1710_v36 = vmul.f32 %v3358_v28, %v1697_v31 }
  0xe4   :  { %2760 = vmatprep.subr.msk.bf16.mxu0 %vm70_vm2, %v1381_v37  ;;  %v3370_v37 = vrot.slane %v2780_v33, %v3075_v9 }
  0xe5   :  { %v1714_v42 = vpack.c.bf16 %v1710_v36, %v1710_v36 }
  0xe6   :  { %v1796_v43 = vmul.f32 %v3370_v37, %v1782_v40  ;;  %v1951_v40 = vsel %vm621_vm8, %v1948_v22, %v1950_v21 }
  0xe8   :  { %v1800_v50 = vpack.c.bf16 %v1796_v43, %v1796_v43  ;;  %v2035_v43 = vpop.permute.xlu1 %2034 }
  0xea   :  { %2758 = vmatmul.mubr.msk.bf16.vlgmr.msra.gmra.mrb[4].mxu0 %vm66_vm3, %v2924_v44  ;;  %v2927_v44 = vld [vmem:[%s3787_s1 + $0x10] sm:$0x3f]  }
  0xeb   :  { %1480 = vmatpush1.bf16.msra.mxu0 %v1474_v46  ;;  %1511 = vmatprep.mubr.bf16.mxu0 %v2943_v1  ;;  %v1725_v46 = vsel %vm70_vm2, %v1714_v42, 0  ;;  %v2798_v42 = vld [vmem:[%s3788_s3 + $0x7] ss:$8 sm:$0x3] }
  0xec   :  { %2766 = vmatprep.subr.msk.bf16.mxu0 %vm70_vm2, %v1545_v49  ;;  %v3380_v49 = vrot.slane %v2780_v33, %v3073_v8  ;;  %v2929_v33 = vld [vmem:[%s3787_s1 + $0x28] sm:$0x3f]  }
  0xee   :  { %v1795_v57 = vmul.f32 %v3380_v49, %v1781_v51 }
  0xf6   :  { %2761 = vmatmul.mubr.msk.bf16.vlgmr.msra.gmra.mrb[4].mxu0 %vm66_vm3, %v2925_v61  ;;  %v1799_v61 = vpack.c.bf16 %v1795_v57, %v1795_v57 }
  0xf7   :  { %1561 = vmatpush1.bf16.msra.mxu0 %v1555_v62  ;;  %1592 = vmatprep.mubr.bf16.mxu0 %v2943_v1  ;;  %v1881_v62 = vmul.f32 %v3392_v59, %v1867_v60  ;;  %v3446_v60 = vrot.slane %v2798_v42, %v3073_v8 }
  0xf8   :  { %2772 = vmatprep.subr.msk.bf16.mxu0 %vm70_vm2, %v1630_v6  ;;  %v2928_v6 = vld [vmem:[%s3787_s1 + $0x18] sm:$0x3f]   ;;  %v1810_v10 = vsel %vm70_vm2, %v1799_v61, 0 }
  0xf9   :  { %v1885_v12 = vpack.c.bf16 %v1881_v62, %v1881_v62 }
 0x102   :  { %2767 = vmatmul.mubr.msk.bf16.vlgmr.msra.gmra.mrb[4].mxu0 %vm66_vm3, %v2926_v26  ;;  %v3414_v26 = vrot.slane %v2792_v19, %v3075_v9 }
 0x103   :  { %1646 = vmatpush1.bf16.msra.mxu0 %v1640_v27  ;;  %1677 = vmatprep.mubr.bf16.mxu0 %v2943_v1  ;;  %v1952_v27 = vsel %vm621_vm8, %v1950_v21, %v1948_v22  ;;  %v3466_v22 = vpop.permute.xlu1 %800 }
 0x104   :  { %2778 = vmatprep.subr.msk.bf16.mxu0 %vm70_vm2, %v1715_v29  ;;  %v1884_v29 = vpack.c.bf16 %v1880_v23, %v1880_v23  ;;  %v1966_v31 = vmul.f32 %v3414_v26, %v1952_v27 }
 0x106   :  { %v1895_v34 = vsel %vm70_vm2, %v1884_v29, 0  ;;  %v1970_v36 = vpack.c.bf16 %v1966_v31, %v1966_v31 }
 0x10e   :  { %2773 = vmatmul.mubr.msk.bf16.vlgmr.msra.gmra.mrb[4].mxu0 %vm66_vm3, %v2927_v44  ;;  %v2033_v44 = vpop.permute.xlu0 %2032 }
 0x10f   :  { %1731 = vmatpush1.bf16.msra.mxu0 %v1725_v46  ;;  %1762 = vmatprep.mubr.bf16.mxu0 %v2943_v1  ;;  %v1965_v46 = vmul.f32 %v3424_v35, %v1951_v40  ;;  %v2037_v51 = vsel %vm709_vm9, %v2035_v43, %v2033_v44 }
 0x110   :  { %2784 = vmatprep.subr.msk.bf16.mxu0 %vm70_vm2, %v1800_v50  ;;  %v3436_v50 = vrot.slane %v2798_v42, %v3075_v9  ;;  %v2036_v9 = vsel %vm709_vm9, %v2033_v44, %v2035_v43 }
 0x111   :  { %v1969_v3 = vpack.c.bf16 %v1965_v46, %v1965_v46  ;;  %v2050_v62 = vmul.f32 %v3446_v60, %v2036_v9  ;;  %v2737_v9 = vld [vmem:[%s3790_s2 + $0x6] sm:$0x3] }
 0x112   :  { %v2051_v53 = vmul.f32 %v3436_v50, %v2037_v51  ;;  %v3464_v19 = vpop.permute.xlu0 %795 }
 0x113   :  { %v1980_v57 = vsel %vm70_vm2, %v1969_v3, 0 }
 0x114   :  { %v2055_v61 = vpack.c.bf16 %v2051_v53, %v2051_v53  ;;  %v815_v53 = vld [vmem:[%s3790_s2] sm:$0x3] }
 0x11a   :  { %2779 = vmatmul.mubr.msk.bf16.vlgmr.msra.gmra.mrb[4].mxu0 %vm66_vm3, %v2928_v6  ;;  %v2054_v6 = vpack.c.bf16 %v2050_v62, %v2050_v62  ;;  %v2740_v62 = vld [vmem:[%s3790_s2 + $0xa] sm:$0x3] }
 0x11b   :  { %1816 = vmatpush1.bf16.msra.mxu0 %v1810_v10  ;;  %1847 = vmatprep.mubr.bf16.mxu0 %v2943_v1  ;;  %v2931_v10 = vld [vmem:[%s3787_s1 + $0x38] sm:$0x3f]  }
 0x11c   :  { %2790 = vmatprep.subr.msk.bf16.mxu0 %vm70_vm2, %v1885_v12  ;;  %v2065_v12 = vsel %vm70_vm2, %v2054_v6, 0  ;;  %v3511_v6 = vld [vmem:[%s3789_s4] sm:$0xf] }
 0x126   :  { %2785 = vmatmul.mubr.msk.bf16.vlgmr.msra.gmra.mrb[4].mxu0 %vm66_vm3, %v2929_v33 }
 0x127   :  { %1901 = vmatpush1.bf16.msra.mxu0 %v1895_v34  ;;  %1932 = vmatprep.mubr.bf16.mxu0 %v2943_v1 }
 0x128   :  { %2796 = vmatprep.subr.msk.bf16.mxu0 %vm70_vm2, %v1970_v36 }
 0x132   :  { %2791 = vmatmul.mubr.msk.bf16.vlgmr.msra.gmra.mrb[4].mxu0 %vm66_vm3, %v2930_v54  ;;  %v2726_v54 = vld [vmem:[%s3790_s2 + $0x8] sm:$0x3] }
 0x133   :  { %1986 = vmatpush1.bf16.msra.mxu0 %v1980_v57  ;;  %2017 = vmatprep.mubr.bf16.mxu0 %v2943_v1  ;;  %v2731_v57 = vld [vmem:[%s3790_s2 + $0x2] sm:$0x3] }
 0x134   :  { %2802 = vmatprep.subr.msk.bf16.mxu0 %vm70_vm2, %v2055_v61  ;;  %v2734_v61 = vld [vmem:[%s3790_s2 + $0x4] sm:$0x3] }
 0x13e   :  { %2797 = vmatmul.mubr.msk.bf16.vlgmr.msra.gmra.mrb[4].mxu0 %vm66_vm3, %v2931_v10  ;;  %v2952_v10 = vmov 1  }
 0x13f   :  { %2071 = vmatpush1.bf16.msra.mxu0 %v2065_v12  ;;  %2102 = vmatprep.mubr.bf16.mxu0 %v2943_v1  ;;  %v2743_v12 = vld [vmem:[%s3790_s2 + $0xc] sm:$0x3] }
 0x140   :  { %2910 = vset.pattern.permute.xlu1 %v2952_v10  ;;  %v2824_v10 = vld [vmem:[%s3790_s2 + $0xe] sm:$0x3] }
 0x141   :  { %1314 = vperm.xlu1 %2910, %v3511_v6  }
 0x14a   :  { %2803 = vmatmul.mubr.msk.bf16.vlgmr.msra.gmra.mrb[4].mxu0 %vm66_vm3, %v2932_v13  ;;  %v2746_v13 = vld [vmem:[%s3790_s2 + $0xe] sm:$0x3] }
 0x1b5   :  { %v780_v21 = vpop.f32.mrb[0].mxu0 }
 0x1b6   :  { %v803_v23 = vadd.f32 %v3464_v19, %v780_v21  ;;  %v782_v27 = vpop.f32.mrb[1].mxu0  ;;  %v2749_v21 = vld [vmem:[%s3790_s2 + $0x10] sm:$0x3] }
 0x1b7   :  { %v804_v29 = vadd.f32 %v3464_v19, %v782_v27  ;;  %v784_v31 = vpop.f32.mrb[2].mxu0 }
 0x1b8   :  { %v805_v33 = vadd.f32 %v3466_v22, %v784_v31  ;;  %v786_v34 = vpop.f32.mrb[3].mxu0  ;;  %v807_v40 = vmax.f32 %v803_v23, 0.0 }
 0x1b9   :  { %v806_v36 = vadd.f32 %v3466_v22, %v786_v34  ;;  %v808_v43 = vmax.f32 %v804_v29, 0.0 }
 0x1ba   :  { %v809_v42 = vmax.f32 %v805_v33, 0.0 }
 0x1bb   :  { %v810_v44 = vmax.f32 %v806_v36, 0.0 }
 0x1bc   :  { %v811_v46 = vpack.c.bf16 %v809_v42, %v807_v40 }
 0x1bd   :  { %v812_v51 = vpack.c.bf16 %v810_v44, %v808_v43 }
 0x1be   :  { %v822_v3 = vsel %vm820_vm10, %v811_v46, 0 }
 0x1bf   :  { %2727 = vmatprep.subr.msk.bf16.mxu1 %vm820_vm10, %v812_v51 }
 0x1c0   :  { %828 = vmatpush1.bf16.msra.mxu1 %v822_v3 }
 0x1c1   :  { %2729 = vmatprep.subr.msk.bf16.mxu1 %vm820_vm10, %v812_v51 }
 0x1c3   :  { %2728 = vmatmul.mubr.msk.bf16.vlgmr.msra.gmra.mrb[0].mxu1 %vm816_vm11, %v815_v53 }
 0x1c4   :  { %880 = vmatpush1.bf16.msra.mxu1 %v822_v3  ;;  %911 = vmatprep.mubr.bf16.mxu1 %v2943_v1 }
 0x1c5   :  { %2732 = vmatprep.subr.msk.bf16.mxu1 %vm820_vm10, %v812_v51 }
 0x1cb   :  { %2730 = vmatmul.mubr.msk.bf16.vlgmr.msra.gmra.mrb[4].mxu1 %vm816_vm11, %v2726_v54  ;;  %v2809_v54 = vld [vmem:[%s3790_s2 + $0x2] sm:$0x3] }
 0x1cc   :  { %926 = vmatpush1.bf16.msra.mxu1 %v822_v3  ;;  %957 = vmatprep.mubr.bf16.mxu1 %v2943_v1 }
 0x1cd   :  { %2735 = vmatprep.subr.msk.bf16.mxu1 %vm820_vm10, %v812_v51 }
 0x1d3   :  { %2733 = vmatmul.mubr.msk.bf16.vlgmr.msra.gmra.mrb[8].mxu1 %vm816_vm11, %v2731_v57  ;;  %v2812_v57 = vld [vmem:[%s3790_s2 + $0x4] sm:$0x3] }
 0x1d4   :  { %982 = vmatpush1.bf16.msra.mxu1 %v822_v3  ;;  %1013 = vmatprep.mubr.bf16.mxu1 %v2943_v1 }
 0x1d5   :  { %2738 = vmatprep.subr.msk.bf16.mxu1 %vm820_vm10, %v812_v51 }
 0x1db   :  { %2736 = vmatmul.mubr.msk.bf16.vlgmr.msra.gmra.mrb[12].mxu1 %vm816_vm11, %v2734_v61  ;;  %v2815_v61 = vld [vmem:[%s3790_s2 + $0x6] sm:$0x3] }
 0x1dc   :  { %1038 = vmatpush1.bf16.msra.mxu1 %v822_v3  ;;  %1069 = vmatprep.mubr.bf16.mxu1 %v2943_v1 }
 0x1dd   :  { %2741 = vmatprep.subr.msk.bf16.mxu1 %vm820_vm10, %v812_v51 }
 0x1e3   :  { %2739 = vmatmul.mubr.msk.bf16.vlgmr.msra.gmra.mrb[16].mxu1 %vm816_vm11, %v2737_v9  ;;  %v2818_v9 = vld [vmem:[%s3790_s2 + $0xa] sm:$0x3] }
 0x1e4   :  { %1094 = vmatpush1.bf16.msra.mxu1 %v822_v3  ;;  %1125 = vmatprep.mubr.bf16.mxu1 %v2943_v1 }
 0x1e5   :  { %2744 = vmatprep.subr.msk.bf16.mxu1 %vm820_vm10, %v812_v51 }
 0x1eb   :  { %2742 = vmatmul.mubr.msk.bf16.vlgmr.msra.gmra.mrb[20].mxu1 %vm816_vm11, %v2740_v62  ;;  %v2821_v62 = vld [vmem:[%s3790_s2 + $0xc] sm:$0x3] }
 0x1ec   :  { %1150 = vmatpush1.bf16.msra.mxu1 %v822_v3  ;;  %1181 = vmatprep.mubr.bf16.mxu1 %v2943_v1 }
 0x1ed   :  { %2747 = vmatprep.subr.msk.bf16.mxu1 %vm820_vm10, %v812_v51 }
 0x1f3   :  { %2745 = vmatmul.mubr.msk.bf16.vlgmr.msra.gmra.mrb[24].mxu1 %vm816_vm11, %v2743_v12  ;;  %v2827_v12 = vld [vmem:[%s3790_s2 + $0x10] sm:$0x3] }
 0x1f4   :  { %1206 = vmatpush1.bf16.msra.mxu1 %v822_v3  ;;  %1237 = vmatprep.mubr.bf16.mxu1 %v2943_v1 }
 0x1f5   :  { %2750 = vmatprep.subr.msk.bf16.mxu1 %vm820_vm10, %v812_v51 }
 0x1fb   :  { %2748 = vmatmul.mubr.msk.bf16.vlgmr.msra.gmra.mrb[28].mxu1 %vm816_vm11, %v2746_v13 }
 0x1fc   :  { %1262 = vmatpush1.bf16.msra.mxu1 %v822_v3  ;;  %1293 = vmatprep.mubr.bf16.mxu1 %v2943_v1 }
 0x203   :  { %2751 = vmatmul.mubr.msk.bf16.vlgmr.msra.gmra.mrb[32].mxu1 %vm816_vm11, %v2749_v21 }
 0x204   :  { %2170 = vmatprep.mubr.bf16.mxu1 %v2943_v1 }
 0x21d   :  { %v2104_v23 = vpop.f32.mrb[4].mxu0 }
 0x21e   :  { %v2117_v27 = vadd.f32 %v2104_v23, %v3464_v19  ;;  %v2106_v29 = vpop.f32.mrb[5].mxu0 }
 0x21f   :  { %v2118_v31 = vadd.f32 %v2106_v29, %v3464_v19  ;;  %v2108_v33 = vpop.f32.mrb[6].mxu0  ;;  %v2128_v19 = vld [vmem:[%s3790_s2] sm:$0x3] }
 0x220   :  { %v2119_v34 = vadd.f32 %v2108_v33, %v3466_v22  ;;  %v2110_v36 = vpop.f32.mrb[7].mxu0  ;;  %v2121_v42 = vmax.f32 %v2117_v27, 0.0 }
 0x221   :  { %v2120_v40 = vadd.f32 %v2110_v36, %v3466_v22  ;;  %v2122_v44 = vmax.f32 %v2118_v31, 0.0  ;;  %v2804_v22 = vld [vmem:[%s3790_s2 + $0x8] sm:$0x3] }
 0x222   :  { %v2123_v43 = vmax.f32 %v2119_v34, 0.0 }
 0x223   :  { %v2124_v46 = vmax.f32 %v2120_v40, 0.0 }
 0x224   :  { %v2125_v51 = vpack.c.bf16 %v2123_v43, %v2121_v42 }
 0x225   :  { %v2126_v3 = vpack.c.bf16 %v2124_v46, %v2122_v44 }
 0x226   :  { %v2133_v53 = vsel %vm820_vm10, %v2125_v51, 0 }
 0x227   :  { %2805 = vmatprep.subr.msk.bf16.mxu1 %vm820_vm10, %v2126_v3 }
 0x228   :  { %2139 = vmatpush1.bf16.msra.mxu1 %v2133_v53 }
 0x229   :  { %2807 = vmatprep.subr.msk.bf16.mxu1 %vm820_vm10, %v2126_v3 }
 0x22b   :  { %2806 = vmatmul.mubr.msk.bf16.vlgmr.msra.gmra.mrb[36].mxu1 %vm816_vm11, %v2128_v19 }
 0x22c   :  { %2191 = vmatpush1.bf16.msra.mxu1 %v2133_v53  ;;  %2222 = vmatprep.mubr.bf16.mxu1 %v2943_v1 }
 0x22d   :  { %2810 = vmatprep.subr.msk.bf16.mxu1 %vm820_vm10, %v2126_v3 }
 0x233   :  { %2808 = vmatmul.mubr.msk.bf16.vlgmr.msra.gmra.mrb[40].mxu1 %vm816_vm11, %v2804_v22 }
 0x234   :  { %2236 = vmatpush1.bf16.msra.mxu1 %v2133_v53  ;;  %2267 = vmatprep.mubr.bf16.mxu1 %v2943_v1 }
 0x235   :  { %2813 = vmatprep.subr.msk.bf16.mxu1 %vm820_vm10, %v2126_v3 }
 0x23b   :  { %2811 = vmatmul.mubr.msk.bf16.vlgmr.msra.gmra.mrb[44].mxu1 %vm816_vm11, %v2809_v54 }
 0x23c   :  { %2291 = vmatpush1.bf16.msra.mxu1 %v2133_v53  ;;  %2322 = vmatprep.mubr.bf16.mxu1 %v2943_v1 }
 0x23d   :  { %2816 = vmatprep.subr.msk.bf16.mxu1 %vm820_vm10, %v2126_v3 }
 0x243   :  { %2814 = vmatmul.mubr.msk.bf16.vlgmr.msra.gmra.mrb[48].mxu1 %vm816_vm11, %v2812_v57 }
 0x244   :  { %2346 = vmatpush1.bf16.msra.mxu1 %v2133_v53  ;;  %2377 = vmatprep.mubr.bf16.mxu1 %v2943_v1 }
 0x245   :  { %2819 = vmatprep.subr.msk.bf16.mxu1 %vm820_vm10, %v2126_v3 }
 0x24b   :  { %2817 = vmatmul.mubr.msk.bf16.vlgmr.msra.gmra.mrb[52].mxu1 %vm816_vm11, %v2815_v61 }
 0x24c   :  { %2401 = vmatpush1.bf16.msra.mxu1 %v2133_v53  ;;  %2432 = vmatprep.mubr.bf16.mxu1 %v2943_v1 }
 0x24d   :  { %2822 = vmatprep.subr.msk.bf16.mxu1 %vm820_vm10, %v2126_v3 }
 0x253   :  { %2820 = vmatmul.mubr.msk.bf16.vlgmr.msra.gmra.mrb[56].mxu1 %vm816_vm11, %v2818_v9 }
 0x254   :  { %2456 = vmatpush1.bf16.msra.mxu1 %v2133_v53  ;;  %2487 = vmatprep.mubr.bf16.mxu1 %v2943_v1 }
 0x255   :  { %2825 = vmatprep.subr.msk.bf16.mxu1 %vm820_vm10, %v2126_v3 }
 0x25b   :  { %2823 = vmatmul.mubr.msk.bf16.vlgmr.msra.gmra.mrb[60].mxu1 %vm816_vm11, %v2821_v62 }
 0x25c   :  { %2511 = vmatpush1.bf16.msra.mxu1 %v2133_v53  ;;  %2542 = vmatprep.mubr.bf16.mxu1 %v2943_v1 }
 0x25d   :  { %2828 = vmatprep.subr.msk.bf16.mxu1 %vm820_vm10, %v2126_v3 }
 0x263   :  { %2826 = vmatmul.mubr.msk.bf16.vlgmr.msra.gmra.mrb[64].mxu1 %vm816_vm11, %v2824_v10 }
 0x264   :  { %2566 = vmatpush1.bf16.msra.mxu1 %v2133_v53  ;;  %2597 = vmatprep.mubr.bf16.mxu1 %v2943_v1 }
 0x26b   :  { %2829 = vmatmul.mubr.msk.bf16.vlgmr.msra.gmra.mrb[68].mxu1 %vm816_vm11, %v2827_v12 }
 0x296   :  { %v861_v13 = vpop.f32.mrb[0].mxu1 }
 0x297   :  { %v863_v21 = vpop.f32.mrb[1].mxu1  ;;  %868 = vrot.lane.b32.xlu1 %v861_v13, %s2944_s20 }
 0x298   :  { %870 = vrot.lane.b32.xlu0 %v863_v21, %s2944_s20  ;;  %v865_v23 = vpop.f32.mrb[2].mxu1 }
 0x299   :  { %v866_v27 = vpop.f32.mrb[3].mxu1 }
 0x29e   :  { %v3593_v29 = vpop.f32.mrb[4].mxu1 }
 0x29f   :  { %v3595_v31 = vpop.f32.mrb[5].mxu1 }
 0x2a0   :  { %v917_v33 = vpop.f32.mrb[6].mxu1 }
 0x2a1   :  { %v918_v1 = vpop.f32.mrb[7].mxu1 }
 0x2a6   :  { %v959_v34 = vpop.f32.mrb[8].mxu1 }
 0x2a7   :  { %v961_v36 = vpop.f32.mrb[9].mxu1  ;;  %966 = vrot.lane.b32.xlu1 %v959_v34, %s2945_s21 }
 0x2a8   :  { %968 = vrot.lane.b32.xlu0 %v961_v36, %s2945_s21  ;;  %v963_v40 = vpop.f32.mrb[10].mxu1 }
 0x2a9   :  { %v964_v42 = vpop.f32.mrb[11].mxu1 }
 0x2ae   :  { %v1015_v43 = vpop.f32.mrb[12].mxu1 }
 0x2af   :  { %v1017_v44 = vpop.f32.mrb[13].mxu1  ;;  %1022 = vrot.lane.b32.xlu1 %v1015_v43, %s2946_s22 }
 0x2b0   :  { %1024 = vrot.lane.b32.xlu0 %v1017_v44, %s2946_s22  ;;  %v1019_v46 = vpop.f32.mrb[14].mxu1 }
 0x2b1   :  { %v1020_v51 = vpop.f32.mrb[15].mxu1 }
 0x2b6   :  { %v1071_v3 = vpop.f32.mrb[16].mxu1 }
 0x2b7   :  { %v1073_v53 = vpop.f32.mrb[17].mxu1  ;;  %1078 = vrot.lane.b32.xlu1 %v1071_v3, %s2947_s23 }
 0x2b8   :  { %1080 = vrot.lane.b32.xlu0 %v1073_v53, %s2947_s23  ;;  %v1075_v19 = vpop.f32.mrb[18].mxu1 }
 0x2b9   :  { %v1076_v22 = vpop.f32.mrb[19].mxu1 }
 0x2be   :  { %v1127_v54 = vpop.f32.mrb[20].mxu1 }
 0x2bf   :  { %v1129_v57 = vpop.f32.mrb[21].mxu1  ;;  %1134 = vrot.lane.b32.xlu1 %v1127_v54, %s2948_s24 }
 0x2c0   :  { %1136 = vrot.lane.b32.xlu0 %v1129_v57, %s2948_s24  ;;  %v1131_v61 = vpop.f32.mrb[22].mxu1 }
 0x2c1   :  { %v1132_v9 = vpop.f32.mrb[23].mxu1 }
 0x2c6   :  { %v1183_v62 = vpop.f32.mrb[24].mxu1 }
 0x2c7   :  { %v1185_v10 = vpop.f32.mrb[25].mxu1  ;;  %1190 = vrot.lane.b32.xlu1 %v1183_v62, %s2949_s25 }
 0x2c8   :  { %1192 = vrot.lane.b32.xlu0 %v1185_v10, %s2949_s25  ;;  %v1187_v12 = vpop.f32.mrb[26].mxu1 }
 0x2c9   :  { %v1188_v13 = vpop.f32.mrb[27].mxu1 }
 0x2ce   :  { %v1239_v21 = vpop.f32.mrb[28].mxu1 }
 0x2cf   :  { %v1241_v23 = vpop.f32.mrb[29].mxu1  ;;  %1246 = vrot.lane.b32.xlu1 %v1239_v21, %s2950_s26 }
 0x2d0   :  { %1248 = vrot.lane.b32.xlu0 %v1241_v23, %s2950_s26  ;;  %v1243_v27 = vpop.f32.mrb[30].mxu1 }
 0x2d1   :  { %v1244_v33 = vpop.f32.mrb[31].mxu1 }
 0x2d2   :  { %v3623_v33 = vpop.permute.xlu1 %1314 }
 0x2d6   :  { %v1295_v1 = vpop.f32.mrb[32].mxu1 }
 0x2d7   :  { %v1297_v34 = vpop.f32.mrb[33].mxu1  ;;  %1302 = vrot.lane.b32.xlu0 %v1295_v1, %s2951_s29 }
 0x2d8   :  { %1304 = vrot.lane.b32.xlu1 %v1297_v34, %s2951_s29  ;;  %v1299_v36 = vpop.f32.mrb[34].mxu1 }
 0x2d9   :  { %v1300_v40 = vpop.f32.mrb[35].mxu1 }
 0x2fe   :  { %v2172_v42 = vpop.f32.mrb[36].mxu1 }
 0x2ff   :  { %v2174_v43 = vpop.f32.mrb[37].mxu1  ;;  %2179 = vrot.lane.b32.xlu1 %v2172_v42, %s2944_s20 }
 0x300   :  { %2181 = vrot.lane.b32.xlu0 %v2174_v43, %s2944_s20  ;;  %v2176_v44 = vpop.f32.mrb[38].mxu1 }
 0x301   :  { %v2177_v46 = vpop.f32.mrb[39].mxu1 }
 0x306   :  { %v3613_v51 = vpop.f32.mrb[40].mxu1 }
 0x307   :  { %v3615_v3 = vpop.f32.mrb[41].mxu1 }
 0x308   :  { %v2228_v53 = vpop.f32.mrb[42].mxu1 }
 0x309   :  { %v2229_v19 = vpop.f32.mrb[43].mxu1  ;;  %v869_v42 = vpop.permute.xlu1 %868 }
 0x30a   :  { %v871_v43 = vpop.permute.xlu0 %870 }
 0x30e   :  { %v2269_v22 = vpop.f32.mrb[44].mxu1 }
 0x30f   :  { %v2271_v54 = vpop.f32.mrb[45].mxu1  ;;  %2276 = vrot.lane.b32.xlu1 %v2269_v22, %s2945_s21 }
 0x310   :  { %2278 = vrot.lane.b32.xlu0 %v2271_v54, %s2945_s21  ;;  %v2273_v57 = vpop.f32.mrb[46].mxu1 }
 0x311   :  { %v2274_v61 = vpop.f32.mrb[47].mxu1 }
 0x316   :  { %v2324_v9 = vpop.f32.mrb[48].mxu1 }
 0x317   :  { %v2326_v62 = vpop.f32.mrb[49].mxu1  ;;  %2331 = vrot.lane.b32.xlu1 %v2324_v9, %s2946_s22 }
 0x318   :  { %2333 = vrot.lane.b32.xlu0 %v2326_v62, %s2946_s22  ;;  %v2328_v10 = vpop.f32.mrb[50].mxu1 }
 0x319   :  { %v2329_v12 = vpop.f32.mrb[51].mxu1  ;;  %v967_v53 = vpop.permute.xlu1 %966 }
 0x31a   :  { %v969_v22 = vpop.permute.xlu0 %968 }
 0x31e   :  { %v2379_v13 = vpop.f32.mrb[52].mxu1 }
 0x31f   :  { %v2381_v21 = vpop.f32.mrb[53].mxu1  ;;  %2386 = vrot.lane.b32.xlu1 %v2379_v13, %s2947_s23  ;;  %v872_v13 = vsel %vm40_vm0, %v869_v42, %v871_v43 }
 0x320   :  { %2388 = vrot.lane.b32.xlu0 %v2381_v21, %s2947_s23  ;;  %v2383_v23 = vpop.f32.mrb[54].mxu1  ;;  %v873_v21 = vsel %vm40_vm0, %v871_v43, %v869_v42 }
 0x321   :  { %v2384_v27 = vpop.f32.mrb[55].mxu1  ;;  %v1023_v57 = vpop.permute.xlu1 %1022 }
 0x322   :  { %v1025_v61 = vpop.permute.xlu0 %1024 }
 0x323   :  { %v1027_v42 = vsel %vm269_vm4, %v1025_v61, %v1023_v57 }
 0x326   :  { %v2434_v1 = vpop.f32.mrb[56].mxu1 }
 0x327   :  { %v2436_v34 = vpop.f32.mrb[57].mxu1  ;;  %2441 = vrot.lane.b32.xlu1 %v2434_v1, %s2948_s24  ;;  %v874_v1 = vmul.f32 %v873_v21, %v3085_v14 }
 0x328   :  { %2443 = vrot.lane.b32.xlu0 %v2436_v34, %s2948_s24  ;;  %v2438_v36 = vpop.f32.mrb[58].mxu1  ;;  %v875_v34 = vmul.f32 %v872_v13, %v3088_v15 }
 0x329   :  { %v2439_v40 = vpop.f32.mrb[59].mxu1  ;;  %v1079_v10 = vpop.permute.xlu1 %1078  ;;  %v970_v36 = vsel %vm181_vm1, %v967_v53, %v969_v22 }
 0x32a   :  { %v1081_v23 = vpop.permute.xlu0 %1080  ;;  %v971_v40 = vsel %vm181_vm1, %v969_v22, %v967_v53  ;;  %v973_v14 = vmul.f32 %v970_v36, %v3092_v17  ;;  %v916_v53 = vadd.f32 %v3595_v31, %v875_v34 }
 0x32b   :  { %v1083_v17 = vsel %vm357_vm5, %v1081_v23, %v1079_v10 }
 0x32e   :  { %v2489_v44 = vpop.f32.mrb[60].mxu1 }
 0x32f   :  { %v2491_v46 = vpop.f32.mrb[61].mxu1  ;;  %2496 = vrot.lane.b32.xlu1 %v2489_v44, %s2949_s25 }
 0x330   :  { %2498 = vrot.lane.b32.xlu0 %v2491_v46, %s2949_s25  ;;  %v2493_v19 = vpop.f32.mrb[62].mxu1 }
 0x331   :  { %v2494_v54 = vpop.f32.mrb[63].mxu1  ;;  %v1135_v44 = vpop.permute.xlu1 %1134  ;;  %v1026_v19 = vsel %vm269_vm4, %v1023_v57, %v1025_v61 }
 0x332   :  { %v1137_v46 = vpop.permute.xlu0 %1136  ;;  %v972_v54 = vmul.f32 %v971_v40, %v3115_v32  ;;  %v1029_v57 = vmul.f32 %v1026_v19, %v3128_v39  ;;  %v1082_v32 = vsel %vm357_vm5, %v1079_v10, %v1081_v23 }
 0x333   :  { %v1138_v31 = vsel %vm445_vm6, %v1135_v44, %v1137_v46  ;;  %v1085_v39 = vmul.f32 %v1082_v32, %v3151_v52 }
 0x334   :  { %v1140_v10 = vmul.f32 %v1138_v31, %v3184_v16 }
 0x336   :  { %v2544_v9 = vpop.f32.mrb[64].mxu1 }
 0x337   :  { %v2546_v62 = vpop.f32.mrb[65].mxu1  ;;  %2551 = vrot.lane.b32.xlu0 %v2544_v9, %s2950_s26  ;;  %v914_v9 = vadd.f32 %v3593_v29, %v874_v1  ;;  %v975_v29 = vadd.f32 %v973_v14, %v916_v53 }
 0x338   :  { %2553 = vrot.lane.b32.xlu1 %v2546_v62, %s2950_s26  ;;  %v2548_v12 = vpop.f32.mrb[66].mxu1 }
 0x339   :  { %v2549_v27 = vpop.f32.mrb[67].mxu1  ;;  %v1191_v22 = vpop.permute.xlu1 %1190  ;;  %v1028_v12 = vmul.f32 %v1027_v42, %v3138_v45  ;;  %v974_v21 = vadd.f32 %v972_v54, %v914_v9  ;;  %v1084_v45 = vmul.f32 %v1083_v17, %v3161_v58  ;;  %v1031_v34 = vadd.f32 %v1029_v57, %v975_v29 }
 0x33a   :  { %v1193_v61 = vpop.permute.xlu0 %1192  ;;  %v1139_v27 = vsel %vm445_vm6, %v1137_v46, %v1135_v44 }
 0x33b   :  { %v1030_v1 = vadd.f32 %v1028_v12, %v974_v21  ;;  %v1141_v23 = vmul.f32 %v1139_v27, %v3174_v5  ;;  %v1194_v19 = vsel %vm533_vm7, %v1191_v22, %v1193_v61  ;;  %v1195_v42 = vsel %vm533_vm7, %v1193_v61, %v1191_v22 }
 0x33c   :  { %v1087_v44 = vadd.f32 %v1085_v39, %v1031_v34  ;;  %v1196_v46 = vmul.f32 %v1194_v19, %v3207_v30  ;;  %v1197_v16 = vmul.f32 %v1195_v42, %v3197_v24 }
 0x33e   :  { %v2599_v43 = vpop.f32.mrb[68].mxu1  ;;  %v1143_v14 = vadd.f32 %v1141_v23, %v1087_v44 }
 0x33f   :  { %2606 = vrot.lane.b32.xlu0 %v2599_v43, %s2951_s29  ;;  %v2601_v15 = vpop.f32.mrb[69].mxu1  ;;  %v1086_v43 = vadd.f32 %v1084_v45, %v1030_v1 }
 0x340   :  { %2608 = vrot.lane.b32.xlu1 %v2601_v15, %s2951_s29  ;;  %v2603_v62 = vpop.f32.mrb[70].mxu1  ;;  %v1199_v57 = vadd.f32 %v1197_v16, %v1143_v14 }
 0x341   :  { %v2604_v13 = vpop.f32.mrb[71].mxu1  ;;  %v1247_v36 = vpop.permute.xlu1 %1246  ;;  %v1142_v5 = vadd.f32 %v1140_v10, %v1086_v43 }
 0x342   :  { %v1249_v40 = vpop.permute.xlu0 %1248 }
 0x343   :  { %v1250_v58 = vsel %vm621_vm8, %v1247_v36, %v1249_v40  ;;  %v1251_v52 = vsel %vm621_vm8, %v1249_v40, %v1247_v36  ;;  %v1198_v12 = vadd.f32 %v1196_v46, %v1142_v5 }
 0x344   :  { %v1252_v9 = vmul.f32 %v1250_v58, %v3236_v48  ;;  %v1253_v53 = vmul.f32 %v1251_v52, %v3226_v41 }
 0x346   :  { %v1254_v32 = vadd.f32 %v1252_v9, %v1198_v12  ;;  %v1255_v17 = vadd.f32 %v1253_v53, %v1199_v57 }
 0x349   :  { %v1303_v54 = vpop.permute.xlu0 %1302 }
 0x34a   :  { %v1305_v15 = vpop.permute.xlu1 %1304 }
 0x34b   :  { %v1306_v22 = vsel %vm709_vm9, %v1303_v54, %v1305_v15  ;;  %v1307_v62 = vsel %vm709_vm9, %v1305_v15, %v1303_v54 }
 0x34c   :  { %v1308_v30 = vmul.f32 %v1306_v22, %v3259_v63  ;;  %v1309_v24 = vmul.f32 %v1307_v62, %v3249_v56 }
 0x34e   :  { %v1310_v61 = vadd.f32 %v1308_v30, %v1254_v32  ;;  %v1311_v13 = vadd.f32 %v1309_v24, %v1255_v17 }
 0x350   :  { %v3684_v48 = vadd.f32 %v3623_v33, %v1310_v61  ;;  %v3687_v41 = vadd.f32 %v3623_v33, %v1311_v13 }
 0x352   :  { %v1320_v21 = vsel %vm1319_vm12, %v3684_v48, 0.0  ;;  %v1321_v29 = vsel %vm1319_vm12, %v3687_v41, 0.0 }
 0x353   :  { %v1322_v63 = vadd.f32 %v1321_v29, %v1320_v21 }
 0x35e   :  { %1323 = vadd.xlane.f32.xlu0 %v1322_v63 }
 0x371   :  { %v2180_v56 = vpop.permute.xlu1 %2179 }
 0x372   :  { %v2182_v31 = vpop.permute.xlu0 %2181 }
 0x373   :  { %v2183_v40 = vsel %vm40_vm0, %v2180_v56, %v2182_v31  ;;  %v2184_v10 = vsel %vm40_vm0, %v2182_v31, %v2180_v56 }
 0x374   :  { %v2185_v44 = vmul.f32 %v2184_v10, %v3281_v25  ;;  %v2186_v58 = vmul.f32 %v2183_v40, %v3271_v18 }
 0x376   :  { %v2225_v18 = vadd.f32 %v3613_v51, %v2185_v44  ;;  %v2227_v9 = vadd.f32 %v3615_v3, %v2186_v58 }
 0x381   :  { %v2277_v27 = vpop.permute.xlu1 %2276 }
 0x382   :  { %v2279_v45 = vpop.permute.xlu0 %2278 }
 0x383   :  { %v2280_v42 = vsel %vm181_vm1, %v2277_v27, %v2279_v45  ;;  %v2281_v43 = vsel %vm181_vm1, %v2279_v45, %v2277_v27 }
 0x384   :  { %v2282_v16 = vmul.f32 %v2281_v43, %v3314_v47  ;;  %v2283_v54 = vmul.f32 %v2280_v42, %v3299_v38 }
 0x386   :  { %v2284_v62 = vadd.f32 %v2282_v16, %v2225_v18  ;;  %v2285_v12 = vadd.f32 %v2283_v54, %v2227_v9 }
 0x389   :  { %v2332_v39 = vpop.permute.xlu1 %2331 }
 0x38a   :  { %v2334_v1 = vpop.permute.xlu0 %2333 }
 0x38b   :  { %v2335_v52 = vsel %vm269_vm4, %v2332_v39, %v2334_v1  ;;  %v2336_v46 = vsel %vm269_vm4, %v2334_v1, %v2332_v39 }
 0x38c   :  { %v2337_v53 = vmul.f32 %v2336_v46, %v3336_v0  ;;  %v2338_v22 = vmul.f32 %v2335_v52, %v3326_v55 }
 0x38e   :  { %v2339_v0 = vadd.f32 %v2337_v53, %v2284_v62  ;;  %v2340_v32 = vadd.f32 %v2338_v22, %v2285_v12 }
 0x391   :  { %v2387_v34 = vpop.permute.xlu1 %2386 }
 0x392   :  { %v2389_v36 = vpop.permute.xlu0 %2388 }
 0x393   :  { %v2390_v15 = vsel %vm357_vm5, %v2387_v34, %v2389_v36  ;;  %v2391_v25 = vsel %vm357_vm5, %v2389_v36, %v2387_v34 }
 0x394   :  { %v2392_v57 = vmul.f32 %v2391_v25, %v3358_v28  ;;  %v2393_v30 = vmul.f32 %v2390_v15, %v3348_v20 }
 0x396   :  { %v2394_v28 = vadd.f32 %v2392_v57, %v2339_v0  ;;  %v2395_v21 = vadd.f32 %v2393_v30, %v2340_v32 }
 0x399   :  { %v2442_v23 = vpop.permute.xlu1 %2441 }
 0x39a   :  { %v2444_v19 = vpop.permute.xlu0 %2443 }
 0x39b   :  { %v2445_v47 = vsel %vm445_vm6, %v2442_v23, %v2444_v19  ;;  %v2446_v38 = vsel %vm445_vm6, %v2444_v19, %v2442_v23 }
 0x39c   :  { %v2447_v17 = vmul.f32 %v2445_v47, %v3380_v49  ;;  %v2448_v61 = vmul.f32 %v2446_v38, %v3370_v37 }
 0x39e   :  { %v2449_v56 = vadd.f32 %v2447_v17, %v2394_v28  ;;  %v2450_v31 = vadd.f32 %v2448_v61, %v2395_v21  ;;  %v2954_v28 = vmov 2  }
 0x39f   :  { %2911 = vset.pattern.permute.xlu0 %v2954_v28  ;;  %2912 = vset.pattern.permute.xlu1 %v2954_v28 }
 0x3a1   :  { %v2497_v5 = vpop.permute.xlu1 %2496 }
 0x3a2   :  { %v2499_v14 = vpop.permute.xlu0 %2498 }
 0x3a3   :  { %v2500_v3 = vsel %vm533_vm7, %v2497_v5, %v2499_v14  ;;  %v2501_v55 = vsel %vm533_vm7, %v2499_v14, %v2497_v5  ;;  %v24_v5 = vld [vmem:[%s3789_s4 + $0x8] sm:$0x1]  ;;  %s2953_s4 = smov 96  }
 0x3a4   :  { %v2502_v29 = vmul.f32 %v2500_v3, %v3402_v11  ;;  %v2503_v63 = vmul.f32 %v2501_v55, %v3392_v59 }
 0x3a6   :  { %v2504_v37 = vadd.f32 %v2502_v29, %v2449_v56  ;;  %v2505_v39 = vadd.f32 %v2503_v63, %v2450_v31 }
 0x3a9   :  { %v2552_v24 = vpop.permute.xlu0 %2551 }
 0x3aa   :  { %v2554_v51 = vpop.permute.xlu1 %2553 }
 0x3ab   :  { %v2555_v13 = vsel %vm621_vm8, %v2552_v24, %v2554_v51  ;;  %v2556_v20 = vsel %vm621_vm8, %v2554_v51, %v2552_v24 }
 0x3ac   :  { %v2557_v27 = vmul.f32 %v2555_v13, %v3424_v35  ;;  %v2558_v49 = vmul.f32 %v2556_v20, %v3414_v26 }
 0x3ae   :  { %v2559_v40 = vadd.f32 %v2557_v27, %v2504_v37  ;;  %v2560_v11 = vadd.f32 %v2558_v49, %v2505_v39 }
 0x3b1   :  { %v2607_v45 = vpop.permute.xlu0 %2606 }
 0x3b2   :  { %v2609_v1 = vpop.permute.xlu1 %2608 }
 0x3b3   :  { %v2610_v34 = vsel %vm709_vm9, %v2607_v45, %v2609_v1  ;;  %v2611_v36 = vsel %vm709_vm9, %v2609_v1, %v2607_v45 }
 0x3b4   :  { %v2612_v59 = vmul.f32 %v2610_v34, %v3446_v60  ;;  %v2613_v10 = vmul.f32 %v2611_v36, %v3436_v50 }
 0x3b6   :  { %v2614_v23 = vadd.f32 %v2612_v59, %v2559_v40  ;;  %v2615_v35 = vadd.f32 %v2613_v10, %v2560_v11  ;;  %v2941_v10 = vld [vmem:[%s3786_s0] sm:$0xff] }
 0x3b8   :  { %v3744_v26 = vadd.f32 %v2614_v23, %v3623_v33  ;;  %v3747_v19 = vadd.f32 %v2615_v35, %v3623_v33 }
 0x3ba   :  { %v2618_v42 = vsel %vm1319_vm12, %v3744_v26, 0.0  ;;  %v2619_v7 = vsel %vm1319_vm12, %v3747_v19, 0.0 }
 0x3bb   :  { %v2620_v43 = vadd.f32 %v2619_v7, %v2618_v42 }
 0x3bd   :  { %2621 = vadd.xlane.f32.xlu1 %v2620_v43 }
 0x3eb   :  { %v1324_v44 = vpop.xlane.xlu0 %1323 }
 0x3ec   :  { %v1325_v60 = vmul.f32 0.00390625, %v1324_v44 }
 0x3ee   :  { %v1326_v50 = vmul.f32 %v1325_v60, %v3511_v6 }
 0x3f0   :  { %v1328_v58 = vsel %vm1327_vm13, %v1326_v50, 0.0 }
 0x3f1   :  { %v1329_v52 = vrot.slane %v1328_v58, 4 }
 0x3f3   :  { %v1330_v46 = vadd.f32 %v1329_v52, %v1328_v58 }
 0x3f5   :  { %v1331_v16 = vrot.slane %v1330_v46, 2 }
 0x3f7   :  { %v1332_v33 = vadd.f32 %v1331_v16, %v1330_v46 }
 0x3f9   :  { %v1333_v54 = vrot.slane %v1332_v33, 1 }
 0x3fb   :  { %v1334_v14 = vadd.f32 %v1333_v54, %v1332_v33 }
 0x3fd   :  { %v1335_v15 = vadd.f32 %v1334_v14, %v24_v5 }
 0x3ff   :  { %v1336_v25 = vmax.f32 %v1335_v15, 0.0 }
 0x401   :  { %v1340_v18 = vrot.slane %v1336_v25, %v3073_v8 }
 0x403   :  { %1342 = vrot.lane.b32.xlu0 %v1340_v18, %s2945_s21 }
 0x44a   :  { %v2622_v9 = vpop.xlane.xlu1 %2621 }
 0x44b   :  { %v2623_v53 = vmul.f32 0.00390625, %v2622_v9 }
 0x44d   :  { %v2624_v22 = vmul.f32 %v2623_v53, %v3511_v6 }
 0x44f   :  { %v2625_v47 = vsel %vm1327_vm13, %v2624_v22, 0.0 }
 0x450   :  { %v2626_v38 = vrot.slane %v2625_v47, 4 }
 0x452   :  { %v2627_v62 = vadd.f32 %v2626_v38, %v2625_v47 }
 0x454   :  { %v2628_v12 = vrot.slane %v2627_v62, 2 }
 0x456   :  { %v2629_v57 = vadd.f32 %v2628_v12, %v2627_v62 }
 0x458   :  { %v2630_v30 = vrot.slane %v2629_v57, 1 }
 0x45a   :  { %v2631_v24 = vadd.f32 %v2630_v30, %v2629_v57 }
 0x45c   :  { %v2632_v51 = vadd.f32 %v2631_v24, %v24_v5 }
 0x45e   :  { %v2633_v3 = vmax.f32 %v2632_v51, 0.0 }
 0x460   :  { %v2637_v55 = vrot.slane %v2633_v3, %v3073_v8 }
 0x462   :  { %2639 = vrot.lane.b32.xlu1 %v2637_v55, %s2945_s21 }
 0x475   :  { %v1343_v0 = vpop.permute.xlu0 %1342 }
 0x476   :  { %v1345_v32 = vmul.f32 %v1343_v0, %v3511_v6 }
 0x478   :  { %1347 = vrot.lane.b32.xlu0 %v1345_v32, %s2953_s4 }
 0x4d4   :  { %v2640_v17 = vpop.permute.xlu1 %2639 }
 0x4d5   :  { %v2642_v61 = vmul.f32 %v2640_v17, %v3511_v6 }
 0x4d7   :  { %2644 = vrot.lane.b32.xlu1 %v2642_v61, %s2953_s4 }
 0x4ea   :  { %v1348_v13 = vpop.permute.xlu0 %1347 }
 0x4eb   :  { %v1351_v20 = vsel %vm1350_vm14, %v1348_v13, 0.0 }
 0x4ec   :  { %1352 = vadd.xlane.f32.xlu0 %v1351_v20 }
 0x549   :  { %v2645_v21 = vpop.permute.xlu1 %2644 }
 0x54a   :  { %v2647_v8 = vsel %vm1350_vm14, %v2645_v21, 0.0 }
 0x54b   :  { %2648 = vadd.xlane.f32.xlu1 %v2647_v8 }
 0x579   :  { %v1353_v29 = vpop.xlane.xlu0 %1352 }
 0x57a   :  { %v1354_v63 = vadd.f32 %v1353_v29, %v3511_v6 }
 0x57c   :  { %v2752_v56 = vmul.f32 -1.442695, %v1354_v63 }
 0x57e   :  { %2933 = vpow2.f32 %v2752_v56 }
 0x588   :  { %v2934_v31 = vpop.eup %2933 }
 0x589   :  { %v1358_v27 = vadd.f32 1.0, %v2934_v31 }
 0x58b   :  { %2935 = vrcp.f32 %v1358_v27 }
 0x595   :  { %v2936_v49 = vpop.eup %2935 }
 0x596   :  { %1363 = vperm.xlu0 %2911, %v2936_v49  }
 0x5d8   :  { %v2649_v45 = vpop.xlane.xlu1 %2648 }
 0x5d9   :  { %v2650_v37 = vadd.f32 %v2649_v45, %v3511_v6 }
 0x5db   :  { %v2830_v39 = vmul.f32 -1.442695, %v2650_v37 }
 0x5dd   :  { %2937 = vpow2.f32 %v2830_v39 }
 0x5e7   :  { %v2938_v1 = vpop.eup %2937 }
 0x5e8   :  { %v2654_v34 = vadd.f32 1.0, %v2938_v1 }
 0x5ea   :  { %2939 = vrcp.f32 %v2654_v34 }
 0x5f4   :  { %v2940_v36 = vpop.eup %2939 }
 0x5f5   :  { %2659 = vperm.xlu1 %2912, %v2940_v36  }
 0x615   :  { %v1364_v40 = vpop.permute.xlu0 %1363 }
 0x616   :  { %v1366_v11 = vmul.f32 %v1364_v40, %v3684_v48  ;;  %v1367_v59 = vmul.f32 %v1364_v40, %v3687_v41  ;;  %v2942_v48 = vld [vmem:[%s3786_s0 + $0x8] sm:$0xff] }
 0x618   :  { %v1368_v23 = vadd.f32 %v2941_v10, %v1366_v11  ;;  %v1369_v35 = vadd.f32 %v1367_v59, %v2996_v2 }
 0x61a   :  { %v1372_v6 = vcombine.low %v1368_v23, %v1369_v35 }
 0x61c   :  { %1374 = vst [vmem:[%s3791_s5] sm:$0xff] %v1372_v6 }
 0x674   :  { %v2660_v42 = vpop.permute.xlu1 %2659 }
 0x675   :  { %v2662_v7 = vmul.f32 %v2660_v42, %v3744_v26  ;;  %v2663_v43 = vmul.f32 %v2660_v42, %v3747_v19 }
 0x677   :  { %v2664_v41 = vadd.f32 %v2942_v48, %v2662_v7  ;;  %v2665_v44 = vadd.f32 %v2663_v43, %v3037_v4 }
 0x679   :  { %v2668_v60 = vcombine.low %v2664_v41, %v2665_v44 }
 0x67b   :  { %2831 = vst [vmem:[%s3791_s5 + $0x8] sm:$0xff] %v2668_v60 }

</bundles_post_ra>
